<compile_context>
chip_gen: v6e
topology: v6e:2x2x1
jax: 0.10.0
libtpu: 0.0.40
codegen_flags: <defaults>
</compile_context>

<pallas_src>
import functools

import jax
import jax.numpy as jnp
from jax import lax
from jax.experimental import pallas as pl
from jax.experimental.pallas import tpu as pltpu

_FACTOR = round(1.0 / (28 * 28), 3)   # matches the PyTorch module: 0.001
_NORM_EPS = 1e-12                     # F.normalize default eps


def _sfem_kernel(fm1_ref, fm1t_ref, fm2_ref, out1_ref, out2_ref, *, factor, eps):
    # Per-batch views (leading block dim of 1 indexed away).
    fm1 = fm1_ref[0]     # (c,  L1)  f32
    fm1t = fm1t_ref[0]   # (L1, c )  f32   (same data, transposed layout)
    fm2 = fm2_ref[0]     # (c,  L2)  f32

    # L2-normalize over the channel axis.
    #   fm1t rows  <-> F.normalize(fm1_t, dim=-1)
    #   fm2  cols  <-> F.normalize(fm2,  dim=1)
    n1 = jnp.sqrt(jnp.sum(fm1t * fm1t, axis=1, keepdims=True))   # (L1, 1)
    n2 = jnp.sqrt(jnp.sum(fm2 * fm2, axis=0, keepdims=True))     # (1, L2)
    fm1tn = fm1t / jnp.maximum(n1, eps)
    fm2n = fm2 / jnp.maximum(n2, eps)

    # M[i, j] = -cos(fm1[:, i], fm2[:, j])  -> (L1, L2); NN matmul on the MXU.
    m = -jnp.dot(fm1tn, fm2n, preferred_element_type=jnp.float32)

    # M_1 = softmax over L1 (axis 0), per column.
    s0 = jnp.exp(m - jnp.max(m, axis=0, keepdims=True))
    s0 = s0 / jnp.sum(s0, axis=0, keepdims=True)

    # M_2^T = softmax over L2 (axis 1), per row.  (M_2[j, i] = s1[i, j])
    s1 = jnp.exp(m - jnp.max(m, axis=1, keepdims=True))
    s1 = s1 / jnp.sum(s1, axis=1, keepdims=True)

    # new_fm2 = fm1 @ M_1             : (c, L1) @ (L1, L2) -> (c, L2)   (NN)
    new_fm2 = jnp.dot(fm1, s0, preferred_element_type=jnp.float32)
    # new_fm1 = fm2 @ M_2 = fm2 @ s1^T: contract L2 of fm2 with axis 1 of s1 (NT)
    new_fm1 = lax.dot_general(fm2, s1, (((1,), (1,)), ((), ())),
                              preferred_element_type=jnp.float32)

    out1_ref[0] = (factor * new_fm1).astype(out1_ref.dtype)   # (c, L1)
    out2_ref[0] = (factor * new_fm2).astype(out2_ref.dtype)   # (c, L2)


@jax.jit
def sfem_forward(fm1, fm2):
    """SFEM forward.  fm1: (b, c, w1, h1); fm2: (b, c, w2, h2) (NCHW)."""
    b, c, w1, h1 = fm1.shape
    _, _, w2, h2 = fm2.shape
    l1 = w1 * h1
    l2 = w2 * h2

    f1 = fm1.reshape(b, c, l1).astype(jnp.float32)     # (b, c, L1)
    f2 = fm2.reshape(b, c, l2).astype(jnp.float32)     # (b, c, L2)
    # Tiny duplicate layout (b, L1, c) so the in-kernel cosine matmul is a
    # natural (L1, c) @ (c, L2) -- avoids in-kernel relayout transposes.
    f1t = jnp.transpose(f1, (0, 2, 1))                 # (b, L1, c)

    kernel = functools.partial(_sfem_kernel, factor=_FACTOR, eps=_NORM_EPS)

    new_f1, new_f2 = pl.pallas_call(
        kernel,
        out_shape=(jax.ShapeDtypeStruct((b, c, l1), jnp.float32),
                   jax.ShapeDtypeStruct((b, c, l2), jnp.float32)),
        grid_spec=pltpu.PrefetchScalarGridSpec(
            num_scalar_prefetch=0,
            grid=(b,),
            in_specs=[
                pl.BlockSpec((1, c, l1), lambda i: (i, 0, 0)),
                pl.BlockSpec((1, l1, c), lambda i: (i, 0, 0)),
                pl.BlockSpec((1, c, l2), lambda i: (i, 0, 0)),
            ],
            out_specs=[
                pl.BlockSpec((1, c, l1), lambda i: (i, 0, 0)),
                pl.BlockSpec((1, c, l2), lambda i: (i, 0, 0)),
            ],
        ),
        compiler_params=pltpu.CompilerParams(
            dimension_semantics=("parallel",),
            vmem_limit_bytes=64 * 1024 * 1024,
        ),
        cost_estimate=pl.CostEstimate(
            flops=6 * b * c * l1 * l2,                 # three matmuls
            transcendentals=2 * b * l1 * l2,           # two softmax exps
            bytes_accessed=4 * b * (3 * c * l1 + 2 * c * l2),
        ),
    )(f1, f1t, f2)

    # (b, c, L) -> NCHW is a free reshape (layouts already match).
    return new_f1.reshape(b, c, w1, h1), new_f2.reshape(b, c, w2, h2)


def _sfem_reference(fm1, fm2, factor=_FACTOR, eps=_NORM_EPS):
    """Pure-JAX mirror of the PyTorch module (for the correctness check)."""
    b, c, w1, h1 = fm1.shape
    _, _, w2, h2 = fm2.shape
    hi = jax.lax.Precision.HIGHEST
    f1 = fm1.reshape(b, c, -1)
    f2 = fm2.reshape(b, c, -1)
    f1t = jnp.transpose(f1, (0, 2, 1))
    f1tn = f1t / jnp.maximum(jnp.linalg.norm(f1t, axis=-1, keepdims=True), eps)
    f2n = f2 / jnp.maximum(jnp.linalg.norm(f2, axis=1, keepdims=True), eps)
    m = -jnp.einsum("blc,bcm->blm", f1tn, f2n, precision=hi)
    m1 = jax.nn.softmax(m, axis=1)
    m2 = jax.nn.softmax(jnp.transpose(m, (0, 2, 1)), axis=1)
    new_f2 = jnp.einsum("bcl,blm->bcm", f1, m1, precision=hi).reshape(b, c, w2, h2)
    new_f1 = jnp.einsum("bcm,bml->bcl", f2, m2, precision=hi).reshape(b, c, w1, h1)
    return factor * new_f1, factor * new_f2


if __name__ == "__main__":
    # Small shapes consistent with the module: batch=2, channels=4,
    # fm1 spatial 16x16 (L1=256), fm2 spatial 8x16 (L2=128) -> lane-dense.
    B, C = 2, 4
    W1, H1 = 16, 16
    W2, H2 = 8, 16

    key = jax.random.PRNGKey(0)
    k1, k2 = jax.random.split(key)
    fm1 = jax.random.normal(k1, (B, C, W1, H1), dtype=jnp.float32)
    fm2 = jax.random.normal(k2, (B, C, W2, H2), dtype=jnp.float32)

    new_fm1, new_fm2 = sfem_forward(fm1, fm2)
    new_fm1 = jax.block_until_ready(new_fm1)
    new_fm2 = jax.block_until_ready(new_fm2)

    ref1, ref2 = _sfem_reference(fm1, fm2)
    assert new_fm1.shape == (B, C, W1, H1)
    assert new_fm2.shape == (B, C, W2, H2)
    assert jnp.allclose(new_fm1, ref1, atol=2e-6, rtol=1e-3)
    assert jnp.allclose(new_fm2, ref2, atol=2e-6, rtol=1e-3)

    print("KERNEL_OK")
</pallas_src>

<mosaic_0001>
module attributes {stable_mosaic.version = 11 : i64} {
  func.func @_sfem_kernel(%arg0: i32, %arg1: memref<1x4x256xf32, #tpu.memory_space<vmem>>, %arg2: memref<1x256x4xf32, #tpu.memory_space<vmem>>, %arg3: memref<1x4x128xf32, #tpu.memory_space<vmem>>, %arg4: memref<1x4x256xf32, #tpu.memory_space<vmem>>, %arg5: memref<1x4x128xf32, #tpu.memory_space<vmem>>) attributes {dimension_semantics = [#tpu.dimension_semantics<parallel>], iteration_bounds = array<i64: 2>, scalar_prefetch = 0 : i64, scratch_operands = 0 : i64, tpu.core_type = #tpu.core_type<tc>, window_params = [{transform_indices = @transform_0, window_bounds = array<i64: 1, 4, 256>}, {transform_indices = @transform_1, window_bounds = array<i64: 1, 256, 4>}, {transform_indices = @transform_2, window_bounds = array<i64: 1, 4, 128>}, {transform_indices = @transform_3, window_bounds = array<i64: 1, 4, 256>}, {transform_indices = @transform_4, window_bounds = array<i64: 1, 4, 128>}]} {
    %c0 = arith.constant 0 : index
    %c0_0 = arith.constant 0 : index
    %c0_1 = arith.constant 0 : index
    %0 = vector.load %arg1[%c0, %c0_0, %c0_1] : memref<1x4x256xf32, #tpu.memory_space<vmem>>, vector<1x4x256xf32>
    %1 = vector.shape_cast %0 : vector<1x4x256xf32> to vector<4x256xf32>
    %c0_2 = arith.constant 0 : index
    %c0_3 = arith.constant 0 : index
    %c0_4 = arith.constant 0 : index
    %2 = vector.load %arg2[%c0_2, %c0_3, %c0_4] : memref<1x256x4xf32, #tpu.memory_space<vmem>>, vector<1x256x4xf32>
    %3 = vector.shape_cast %2 : vector<1x256x4xf32> to vector<256x4xf32>
    %c0_5 = arith.constant 0 : index
    %c0_6 = arith.constant 0 : index
    %c0_7 = arith.constant 0 : index
    %4 = vector.load %arg3[%c0_5, %c0_6, %c0_7] : memref<1x4x128xf32, #tpu.memory_space<vmem>>, vector<1x4x128xf32>
    %5 = vector.shape_cast %4 : vector<1x4x128xf32> to vector<4x128xf32>
    %6 = arith.mulf %3, %3 : vector<256x4xf32>
    %cst = arith.constant dense<0.000000e+00> : vector<256xf32>
    %7 = vector.multi_reduction <add>, %6, %cst [1] : vector<256x4xf32> to vector<256xf32>
    %8 = vector.shape_cast %7 : vector<256xf32> to vector<256x1xf32>
    %9 = math.sqrt %8 : vector<256x1xf32>
    %10 = arith.mulf %5, %5 : vector<4x128xf32>
    %cst_8 = arith.constant dense<0.000000e+00> : vector<128xf32>
    %11 = vector.multi_reduction <add>, %10, %cst_8 [0] : vector<4x128xf32> to vector<128xf32>
    %12 = vector.shape_cast %11 : vector<128xf32> to vector<1x128xf32>
    %13 = math.sqrt %12 : vector<1x128xf32>
    %cst_9 = arith.constant 9.99999996E-13 : f32
    %14 = vector.broadcast %cst_9 : f32 to vector<256x1xf32>
    %15 = arith.maximumf %9, %14 : vector<256x1xf32>
    %16 = vector.broadcast %15 : vector<256x1xf32> to vector<256x4xf32>
    %17 = arith.divf %3, %16 : vector<256x4xf32>
    %cst_10 = arith.constant 9.99999996E-13 : f32
    %18 = vector.broadcast %cst_10 : f32 to vector<1x128xf32>
    %19 = arith.maximumf %13, %18 : vector<1x128xf32>
    %20 = vector.broadcast %19 : vector<1x128xf32> to vector<4x128xf32>
    %21 = arith.divf %5, %20 : vector<4x128xf32>
    %cst_11 = arith.constant dense<0.000000e+00> : vector<256x128xf32>
    %22 = tpu.matmul %17, %21, %cst_11 {dimension_numbers = #tpu.dot_dimension_numbers<[1], [0], [0], [1], [0, 0, 1, 1], [], []>} : vector<256x4xf32>, vector<4x128xf32>, vector<256x128xf32> -> vector<256x128xf32>
    %cst_12 = arith.constant 0.000000e+00 : f32
    %23 = vector.broadcast %cst_12 : f32 to vector<256x128xf32>
    %24 = arith.subf %23, %22 : vector<256x128xf32>
    %cst_13 = arith.constant dense<0xFF800000> : vector<128xf32>
    %25 = vector.multi_reduction <maximumf>, %24, %cst_13 [0] : vector<256x128xf32> to vector<128xf32>
    %26 = vector.shape_cast %25 : vector<128xf32> to vector<1x128xf32>
    %27 = vector.broadcast %26 : vector<1x128xf32> to vector<256x128xf32>
    %28 = arith.subf %24, %27 : vector<256x128xf32>
    %29 = math.exp %28 : vector<256x128xf32>
    %cst_14 = arith.constant dense<0.000000e+00> : vector<128xf32>
    %30 = vector.multi_reduction <add>, %29, %cst_14 [0] : vector<256x128xf32> to vector<128xf32>
    %31 = vector.shape_cast %30 : vector<128xf32> to vector<1x128xf32>
    %32 = vector.broadcast %31 : vector<1x128xf32> to vector<256x128xf32>
    %33 = arith.divf %29, %32 : vector<256x128xf32>
    %cst_15 = arith.constant dense<0xFF800000> : vector<256xf32>
    %34 = vector.multi_reduction <maximumf>, %24, %cst_15 [1] : vector<256x128xf32> to vector<256xf32>
    %35 = vector.shape_cast %34 : vector<256xf32> to vector<256x1xf32>
    %36 = vector.broadcast %35 : vector<256x1xf32> to vector<256x128xf32>
    %37 = arith.subf %24, %36 : vector<256x128xf32>
    %38 = math.exp %37 : vector<256x128xf32>
    %cst_16 = arith.constant dense<0.000000e+00> : vector<256xf32>
    %39 = vector.multi_reduction <add>, %38, %cst_16 [1] : vector<256x128xf32> to vector<256xf32>
    %40 = vector.shape_cast %39 : vector<256xf32> to vector<256x1xf32>
    %41 = vector.broadcast %40 : vector<256x1xf32> to vector<256x128xf32>
    %42 = arith.divf %38, %41 : vector<256x128xf32>
    %cst_17 = arith.constant dense<0.000000e+00> : vector<4x128xf32>
    %43 = tpu.matmul %1, %33, %cst_17 {dimension_numbers = #tpu.dot_dimension_numbers<[1], [0], [0], [1], [0, 0, 1, 1], [], []>} : vector<4x256xf32>, vector<256x128xf32>, vector<4x128xf32> -> vector<4x128xf32>
    %cst_18 = arith.constant dense<0.000000e+00> : vector<4x256xf32>
    %44 = tpu.matmul %5, %42, %cst_18 {dimension_numbers = #tpu.dot_dimension_numbers<[1], [1], [0], [0], [0, 0, 1, 0], [], []>} : vector<4x128xf32>, vector<256x128xf32>, vector<4x256xf32> -> vector<4x256xf32>
    %cst_19 = arith.constant 1.000000e-03 : f32
    %45 = vector.broadcast %cst_19 : f32 to vector<4x256xf32>
    %46 = arith.mulf %45, %44 : vector<4x256xf32>
    %c0_20 = arith.constant 0 : index
    %c0_21 = arith.constant 0 : index
    %c0_22 = arith.constant 0 : index
    %47 = vector.load %arg4[%c0_20, %c0_21, %c0_22] : memref<1x4x256xf32, #tpu.memory_space<vmem>>, vector<1x4x256xf32>
    %48 = vector.shape_cast %47 : vector<1x4x256xf32> to vector<4x256xf32>
    %49 = vector.shape_cast %46 : vector<4x256xf32> to vector<1x4x256xf32>
    tpu.vector_store %arg4[%c0_20, %c0_21, %c0_22], %49 {strides = array<i32>} : memref<1x4x256xf32, #tpu.memory_space<vmem>>, vector<1x4x256xf32>,
    %cst_23 = arith.constant 1.000000e-03 : f32
    %50 = vector.broadcast %cst_23 : f32 to vector<4x128xf32>
    %51 = arith.mulf %50, %43 : vector<4x128xf32>
    %c0_24 = arith.constant 0 : index
    %c0_25 = arith.constant 0 : index
    %c0_26 = arith.constant 0 : index
    %52 = vector.load %arg5[%c0_24, %c0_25, %c0_26] : memref<1x4x128xf32, #tpu.memory_space<vmem>>, vector<1x4x128xf32>
    %53 = vector.shape_cast %52 : vector<1x4x128xf32> to vector<4x128xf32>
    %54 = vector.shape_cast %51 : vector<4x128xf32> to vector<1x4x128xf32>
    tpu.vector_store %arg5[%c0_24, %c0_25, %c0_26], %54 {strides = array<i32>} : memref<1x4x128xf32, #tpu.memory_space<vmem>>, vector<1x4x128xf32>,
    return
  }
  func.func @transform_0(%arg0: i32) -> (i32, i32, i32) {
    %c0_i32 = arith.constant 0 : i32
    %c0_i32_0 = arith.constant 0 : i32
    %c0_i32_1 = arith.constant 0 : i32
    return %arg0, %c0_i32, %c0_i32_0 : i32, i32, i32
  }
  func.func @transform_1(%arg0: i32) -> (i32, i32, i32) {
    %c0_i32 = arith.constant 0 : i32
    %c0_i32_0 = arith.constant 0 : i32
    %c0_i32_1 = arith.constant 0 : i32
    return %arg0, %c0_i32, %c0_i32_0 : i32, i32, i32
  }
  func.func @transform_2(%arg0: i32) -> (i32, i32, i32) {
    %c0_i32 = arith.constant 0 : i32
    %c0_i32_0 = arith.constant 0 : i32
    %c0_i32_1 = arith.constant 0 : i32
    return %arg0, %c0_i32, %c0_i32_0 : i32, i32, i32
  }
  func.func @transform_3(%arg0: i32) -> (i32, i32, i32) {
    %c0_i32 = arith.constant 0 : i32
    %c0_i32_0 = arith.constant 0 : i32
    %c0_i32_1 = arith.constant 0 : i32
    return %arg0, %c0_i32, %c0_i32_0 : i32, i32, i32
  }
  func.func @transform_4(%arg0: i32) -> (i32, i32, i32) {
    %c0_i32 = arith.constant 0 : i32
    %c0_i32_0 = arith.constant 0 : i32
    %c0_i32_1 = arith.constant 0 : i32
    return %arg0, %c0_i32, %c0_i32_0 : i32, i32, i32
  }
}

</mosaic_0001>

<bundles_post_ra>
// kernel: sfem_forward.1
= control target key start
LH: loop header
LB: loop body
LE: loop exit
PB: predicated region body
PF: predicated region fallthrough
CT: control target
= control target key end

     0   :  { %s2431_s15 = smov 0   ;;  %s3565_s0 = inlined_call_operand.vmem [shape: f32[2,4,256], index: 0, kind: input, shape index: {}]   ;;  %s3566_s1 = inlined_call_operand.vmem [shape: f32[2,256,4], index: 1, kind: input, shape index: {}]   ;;  %s3567_s2 = inlined_call_operand.vmem [shape: f32[2,4,128], index: 2, kind: input, shape index: {}]   ;;  %s3568_s3 = inlined_call_operand.vmem [shape: f32[2,4,256], index: 3, kind: output, shape index: {0}]   ;;  %s3569_s4 = inlined_call_operand.vmem [shape: f32[2,4,128], index: 4, kind: output, shape index: {1}]  }
   0x1 LB: > { %s1858_s16 = sadd.s32 4294967295, %s2404_s15   ;;  %p1862_p0 = scmp.ge.s32.totalorder %s2404_s15, 1  ;;  %s2404_s15 = sphi %s2431_s15, %s15_s15  }
   0x2   : > { %p184_p1 = scmp.lt.s32.totalorder %s2404_s15, 3 }
   0x4   : > { %p185_p2 = pnand %p1862_p0, %p184_p1 }
   0x6   : > { %188 = sbr.rel (%p185_p2) target bundleno = 1039 (0x40f), region = 32 }
   0xb   : > { %p223_p3 = scmp.lt.s32.totalorder %s1858_s16, 1  ;;  %vm312_vm0 = vcmask 31744   ;;  %vm634_vm1 = vcmask 1043456  }
   0xd   : > { %s3629_s16 = smov (!%p223_p3, %s1858_s16), 1 }
   0xe   : > { %s1907_s17 = sshll.u32 %s3629_s16, 8  ;;  %s1867_s21 = sshll.u32 %s3629_s16, 2 }
   0xf   : > { %s2445_s20 = scalar_lea.vmem %s3566_s1, %s1907_s17  ;;  %s2505_s24 = scalar_lea.vmem %s3567_s2, %s1867_s21 }
  0x10   : > { %v2448_v0 = vld [vmem:[%s2445_s20 + $0x10] sm:$0xff]  ;;  %v2451_v1 = vld [vmem:[%s2445_s20] sm:$0xff]  ;;  %v2454_v2 = vld [vmem:[%s2445_s20 + $0x18] sm:$0xff]  ;;  %s1906_s25 = sshll.u32 %s3629_s16, 3  ;;  %s245_s5 = scalar_lea.vmem %s3569_s4, %s1867_s21 }
  0x11   : > { %v282_v3 = vmul.f32 %v2448_v0, %v2448_v0  ;;  %v280_v4 = vmul.f32 %v2451_v1, %v2451_v1  ;;  %v283_v5 = vmul.f32 %v2454_v2, %v2454_v2  ;;  %v2463_v6 = vld [vmem:[%s2445_s20 + $0x8] sm:$0xff]  ;;  %v2471_v9 = vld [vmem:[%s2445_s20 + $0x20] sm:$0xff]  ;;  %v2482_v16 = vld [vmem:[%s2445_s20 + $0x38] sm:$0xff]  ;;  %s227_s28 = scalar_lea.vmem %s3565_s0, %s1906_s25  ;;  %s241_s8 = scalar_lea.vmem %s3568_s3, %s1906_s25 }
  0x12   : > { %v281_v7 = vmul.f32 %v2463_v6, %v2463_v6  ;;  %v2468_v8 = vld [vmem:[%s2445_s20 + $0x28] sm:$0xff]  ;;  %v284_v15 = vmul.f32 %v2471_v9, %v2471_v9  ;;  %v2485_v17 = vld [vmem:[%s2445_s20 + $0x30] sm:$0xff]  ;;  %v287_v20 = vmul.f32 %v2482_v16, %v2482_v16  ;;  %v2498_v23 = vld [vmem:[%s2445_s20 + $0x40] sm:$0xff] }
  0x13   : > { %v319_v10 = vsel %vm312_vm0, %v282_v3, 0.0  ;;  %v313_v11 = vsel %vm312_vm0, %v280_v4, 0.0  ;;  %v322_v12 = vsel %vm312_vm0, %v283_v5, 0.0  ;;  %v285_v14 = vmul.f32 %v2468_v8, %v2468_v8  ;;  %v2495_v22 = vld [vmem:[%s2445_s20 + $0x48] sm:$0xff]  ;;  %v2514_v28 = vld [vmem:[%s2445_s20 + $0x58] sm:$0xff]  ;;  %v2517_v29 = vld [vmem:[%s2445_s20 + $0x50] sm:$0xff] }
  0x14   : > { %320 = vadd.xlane.f32.xlu1 %v319_v10  ;;  %314 = vadd.xlane.f32.xlu0 %v313_v11  ;;  %v316_v13 = vsel %vm312_vm0, %v281_v7, 0.0  ;;  %v325_v19 = vsel %vm312_vm0, %v284_v15, 0.0  ;;  %v286_v21 = vmul.f32 %v2485_v17, %v2485_v17  ;;  %v334_v24 = vsel %vm312_vm0, %v287_v20, 0.0  ;;  %v2520_v30 = vld [vmem:[%s2505_s24] sm:$0xf]  ;;  %v2531_v36 = vld [vmem:[%s2445_s20 + $0x68] sm:$0xff] }
  0x15   : > { %v328_v18 = vsel %vm312_vm0, %v285_v14, 0.0  ;;  %v289_v26 = vmul.f32 %v2495_v22, %v2495_v22  ;;  %v288_v27 = vmul.f32 %v2498_v23, %v2498_v23  ;;  %v291_v31 = vmul.f32 %v2514_v28, %v2514_v28  ;;  %v2534_v37 = vld [vmem:[%s2445_s20 + $0x60] sm:$0xff]  ;;  %v2544_v44 = vld [vmem:[%s2445_s20 + $0x78] sm:$0xff]  ;;  %v2547_v45 = vld [vmem:[%s2445_s20 + $0x70] sm:$0xff] }
  0x16   : > { %v331_v25 = vsel %vm312_vm0, %v286_v21, 0.0  ;;  %v290_v32 = vmul.f32 %v2517_v29, %v2517_v29  ;;  %v633_v35 = vmul.f32 %v2520_v30, %v2520_v30  ;;  %v293_v42 = vmul.f32 %v2531_v36, %v2531_v36  ;;  %v2556_v52 = vld [vmem:[%s2445_s20 + $0x88] sm:$0xff]  ;;  %v2559_v53 = vld [vmem:[%s2445_s20 + $0x80] sm:$0xff]  ;;  %v2568_v60 = vld [vmem:[%s2445_s20 + $0x98] sm:$0xff] }
  0x17   : > { %v340_v33 = vsel %vm312_vm0, %v289_v26, 0.0  ;;  %v337_v34 = vsel %vm312_vm0, %v288_v27, 0.0  ;;  %v346_v40 = vsel %vm312_vm0, %v291_v31, 0.0  ;;  %v292_v43 = vmul.f32 %v2534_v37, %v2534_v37  ;;  %v2571_v61 = vld [vmem:[%s2445_s20 + $0x90] sm:$0xff]  ;;  %v2580_v7 = vld [vmem:[%s2445_s20 + $0xa8] sm:$0xff]  ;;  %v2583_v10 = vld [vmem:[%s2445_s20 + $0xa0] sm:$0xff] }
  0x18   : > { %323 = vadd.xlane.f32.xlu1 %v322_v12  ;;  %317 = vadd.xlane.f32.xlu0 %v316_v13  ;;  %v635_v38 = vsel %vm634_vm1, %v633_v35, 0.0  ;;  %v343_v41 = vsel %vm312_vm0, %v290_v32, 0.0  ;;  %v352_v48 = vsel %vm312_vm0, %v293_v42, 0.0  ;;  %v295_v50 = vmul.f32 %v2544_v44, %v2544_v44  ;;  %v2592_v15 = vld [vmem:[%s2445_s20 + $0xb8] sm:$0xff]  ;;  %v2607_v26 = vld [vmem:[%s2445_s20 + $0xc0] sm:$0xff] }
  0x19   : > { %v636_v39 = vrot.slane %v635_v38, 4  ;;  %v349_v49 = vsel %vm312_vm0, %v292_v43, 0.0  ;;  %v294_v51 = vmul.f32 %v2547_v45, %v2547_v45  ;;  %v297_v58 = vmul.f32 %v2556_v52, %v2556_v52  ;;  %v2616_v35 = vld [vmem:[%s2445_s20 + $0xd8] sm:$0xff] }
  0x1a   : > { %v358_v56 = vsel %vm312_vm0, %v295_v50, 0.0  ;;  %v296_v59 = vmul.f32 %v2559_v53, %v2559_v53  ;;  %v299_v4 = vmul.f32 %v2568_v60, %v2568_v60  ;;  %v298_v5 = vmul.f32 %v2571_v61, %v2571_v61  ;;  %v2631_v50 = vld [vmem:[%s2445_s20 + $0xe0] sm:$0xff] }
  0x1b   : > { %v637_v46 = vadd.f32 %v636_v39, %v635_v38  ;;  %v355_v57 = vsel %vm312_vm0, %v294_v51, 0.0  ;;  %v364_v63 = vsel %vm312_vm0, %v297_v58, 0.0  ;;  %v301_v13 = vmul.f32 %v2580_v7, %v2580_v7  ;;  %v2619_v39 = vld [vmem:[%s2445_s20 + $0xd0] sm:$0xff]  ;;  %v2640_v58 = vld [vmem:[%s2445_s20 + $0xf8] sm:$0xff] }
  0x1c   : > { %329 = vadd.xlane.f32.xlu1 %v328_v18  ;;  %326 = vadd.xlane.f32.xlu0 %v325_v19  ;;  %v361_v3 = vsel %vm312_vm0, %v296_v59, 0.0  ;;  %v370_v11 = vsel %vm312_vm0, %v299_v4, 0.0  ;;  %v367_v12 = vsel %vm312_vm0, %v298_v5, 0.0  ;;  %v300_v14 = vmul.f32 %v2583_v10, %v2583_v10  ;;  %v2595_v18 = vld [vmem:[%s2445_s20 + $0xb0] sm:$0xff]  ;;  %3590 = vst [vmem:[#allocation3_spill] sm:$0xff] %v2640_v58 }
  0x1d   : > { %v638_v47 = vrot.slane %v637_v46, 2  ;;  %v303_v19 = vmul.f32 %v2592_v15, %v2592_v15  ;;  %v376_v20 = vsel %vm312_vm0, %v301_v13, 0.0  ;;  %v2643_v59 = vld [vmem:[%s2445_s20 + $0xf0] sm:$0xff] }
  0x1e   : > { %v373_v21 = vsel %vm312_vm0, %v300_v14, 0.0  ;;  %v310_v4 = vmul.f32 %v2643_v59, %v2643_v59 }
  0x1f   : > { %v639_v54 = vadd.f32 %v638_v47, %v637_v46  ;;  %v382_v27 = vsel %vm312_vm0, %v303_v19, 0.0  ;;  %v306_v47 = vmul.f32 %v2619_v39, %v2619_v39 }
  0x20   : > { %335 = vadd.xlane.f32.xlu1 %v334_v24  ;;  %332 = vadd.xlane.f32.xlu0 %v331_v25  ;;  %v302_v24 = vmul.f32 %v2595_v18, %v2595_v18  ;;  %v2604_v25 = vld [vmem:[%s2445_s20 + $0xc8] sm:$0xff] }
  0x21   : > { %v640_v55 = vrot.slane %v639_v54, 1  ;;  %v305_v31 = vmul.f32 %v2604_v25, %v2604_v25 }
  0x23   : > { %v641_v62 = vadd.f32 %v640_v55, %v639_v54  ;;  %v388_v43 = vsel %vm312_vm0, %v305_v31, 0.0  ;;  %v391_v55 = vsel %vm312_vm0, %v306_v47, 0.0 }
  0x24   : > { %341 = vadd.xlane.f32.xlu1 %v340_v33  ;;  %338 = vadd.xlane.f32.xlu0 %v337_v34  ;;  %v379_v33 = vsel %vm312_vm0, %v302_v24, 0.0  ;;  %v304_v34 = vmul.f32 %v2607_v26, %v2607_v26 }
  0x25   : > { %2070 = vrsqrt.f32 %v641_v62  ;;  %vm644_vm2 = vcmp.eq.f32.partialorder %v641_v62, inf  ;;  %v647_v38 = vand.u32 2147483648, %v641_v62  ;;  %vm646_vm3 = vcmp.eq.f32.partialorder %v641_v62, 0.0 }
  0x26   : > { %v385_v46 = vsel %vm312_vm0, %v304_v34, 0.0 }
  0x28   : > { %347 = vadd.xlane.f32.xlu1 %v346_v40  ;;  %344 = vadd.xlane.f32.xlu0 %v343_v41  ;;  %v307_v41 = vmul.f32 %v2616_v35, %v2616_v35 }
  0x2a   : > { %v394_v54 = vsel %vm312_vm0, %v307_v41, 0.0 }
  0x2c   : > { %353 = vadd.xlane.f32.xlu1 %v352_v48  ;;  %350 = vadd.xlane.f32.xlu0 %v349_v49  ;;  %v2628_v49 = vld [vmem:[%s2445_s20 + $0xe8] sm:$0xff] }
  0x2d   : > { %3589 = vst [vmem:[#allocation2_spill] sm:$0xff] %v2628_v49 }
  0x30   : > { %359 = vadd.xlane.f32.xlu1 %v358_v56  ;;  %356 = vadd.xlane.f32.xlu0 %v355_v57  ;;  %v309_v56 = vmul.f32 %v2628_v49, %v2628_v49  ;;  %v308_v57 = vmul.f32 %v2631_v50, %v2631_v50 }
  0x32   : > { %v2071_v32 = vpop.eup %2070 }
  0x33   : > { %v643_v40 = vmul.f32 %v2071_v32, %v641_v62 }
  0x34   : > { %365 = vadd.xlane.f32.xlu1 %v364_v63  ;;  %362 = vadd.xlane.f32.xlu0 %v361_v3  ;;  %v397_v63 = vsel %vm312_vm0, %v308_v57, 0.0  ;;  %v311_v3 = vmul.f32 %v2640_v58, %v2640_v58 }
  0x35   : > { %v645_v42 = vsel %vm644_vm2, %v641_v62, %v643_v40  ;;  %v400_v62 = vsel %vm312_vm0, %v309_v56, 0.0 }
  0x36   : > { %v648_v48 = vsel %vm646_vm3, %v647_v38, %v645_v42  ;;  %v406_v5 = vsel %vm312_vm0, %v311_v3, 0.0 }
  0x37   : > { %v745_v51 = vmax.f32 %v648_v48, 1e-12 }
  0x38   : > { %371 = vadd.xlane.f32.xlu1 %v370_v11  ;;  %368 = vadd.xlane.f32.xlu0 %v367_v12  ;;  %v403_v11 = vsel %vm312_vm0, %v310_v4, 0.0 }
  0x39   : > { %2072 = vrcp.f32 %v745_v51 }
  0x3c   : > { %377 = vadd.xlane.f32.xlu1 %v376_v20  ;;  %374 = vadd.xlane.f32.xlu0 %v373_v21 }
  0x40   : > { %383 = vadd.xlane.f32.xlu1 %v382_v27  ;;  %380 = vadd.xlane.f32.xlu0 %v379_v33 }
  0x44   : > { %389 = vadd.xlane.f32.xlu1 %v388_v43  ;;  %386 = vadd.xlane.f32.xlu0 %v385_v46 }
  0x46   : > { %v2073_v12 = vpop.eup %2072 }
  0x47   : > { %v747_v13 = vmul.f32 %v2073_v12, %v2520_v30 }
  0x48   : > { %395 = vadd.xlane.f32.xlu1 %v394_v54  ;;  %392 = vadd.xlane.f32.xlu0 %v391_v55 }
  0x49   : > { %2011 = vmatprep.subr.msk.mxu0 %vm634_vm1, %v747_v13 }
  0x4a   : > { %2012 = vmatpush3.msk.msra.mxu0 %vm634_vm1, %v747_v13 }
  0x4c   : > { %401 = vadd.xlane.f32.xlu1 %v400_v62  ;;  %398 = vadd.xlane.f32.xlu0 %v397_v63 }
  0x50   : > { %407 = vadd.xlane.f32.xlu1 %v406_v5  ;;  %404 = vadd.xlane.f32.xlu0 %v403_v11 }
  0x9d   : > { %v321_v14 = vpop.xlane.xlu1 %320  ;;  %v315_v19 = vpop.xlane.xlu0 %314 }
  0x9e   : > { %2074 = vrsqrt.f32 %v321_v14  ;;  %vm425_vm4 = vcmp.eq.f32.partialorder %v321_v14, inf  ;;  %vm411_vm5 = vcmp.eq.f32.partialorder %v315_v19, inf  ;;  %v414_v46 = vand.u32 2147483648, %v315_v19 }
  0x9f   : > { %2076 = vrsqrt.f32 %v315_v19  ;;  %v428_v48 = vand.u32 2147483648, %v321_v14  ;;  %vm413_vm6 = vcmp.eq.f32.partialorder %v315_v19, 0.0  ;;  %vm427_vm7 = vcmp.eq.f32.partialorder %v321_v14, 0.0 }
  0xa1   : > { %v2656_v20 = vpop.xlane.xlu1 %323  ;;  %v318_v21 = vpop.xlane.xlu0 %317 }
  0xa2   : > { %2078 = vrsqrt.f32 %v318_v21  ;;  %vm418_vm8 = vcmp.eq.f32.partialorder %v318_v21, inf  ;;  %v421_v63 = vand.u32 2147483648, %v318_v21  ;;  %vm420_vm9 = vcmp.eq.f32.partialorder %v318_v21, 0.0 }
  0xa3   : > { %2080 = vrsqrt.f32 %v2656_v20  ;;  %vm432_vm10 = vcmp.eq.f32.partialorder %v2656_v20, inf  ;;  %vm434_vm11 = vcmp.eq.f32.partialorder %v2656_v20, 0.0 }
  0xa5   : > { %v2659_v24 = vpop.xlane.xlu1 %329  ;;  %v2661_v27 = vpop.xlane.xlu0 %326 }
  0xa6   : > { %2082 = vrsqrt.f32 %v2661_v27  ;;  %vm446_vm12 = vcmp.eq.f32.partialorder %v2659_v24, inf  ;;  %vm448_vm13 = vcmp.eq.f32.partialorder %v2659_v24, 0.0  ;;  %vm439_vm14 = vcmp.eq.f32.partialorder %v2661_v27, inf }
  0xa7   : > { %2084 = vrsqrt.f32 %v2659_v24  ;;  %vm441_vm15 = vcmp.eq.f32.partialorder %v2661_v27, 0.0 }
  0xa9   : > { %v2665_v30 = vpop.xlane.xlu1 %335  ;;  %v2667_v31 = vpop.xlane.xlu0 %332 }
  0xaa   : > { %2086 = vrsqrt.f32 %v2665_v30  ;;  %vm460_vm1 = vcmp.eq.f32.partialorder %v2665_v30, inf  ;;  %vm462_vm2 = vcmp.eq.f32.partialorder %v2665_v30, 0.0  ;;  %vm453_vm3 = vcmp.eq.f32.partialorder %v2667_v31, inf }
  0xab   : > { %v2075_v32 = vpop.eup %2074  ;;  %2088 = vrsqrt.f32 %v2667_v31 }
  0xac   : > { %v2077_v33 = vpop.eup %2076  ;;  %v424_v34 = vmul.f32 %v2075_v32, %v321_v14 }
  0xad   : > { %v410_v38 = vmul.f32 %v2077_v33, %v315_v19  ;;  %v2671_v40 = vpop.xlane.xlu1 %341  ;;  %v2673_v41 = vpop.xlane.xlu0 %338 }
  0xae   : > { %v426_v42 = vsel %vm425_vm4, %v321_v14, %v424_v34  ;;  %2090 = vrsqrt.f32 %v2671_v40  ;;  %vm455_vm4 = vcmp.eq.f32.partialorder %v2667_v31, 0.0 }
  0xaf   : > { %v412_v43 = vsel %vm411_vm5, %v315_v19, %v410_v38  ;;  %v2079_v47 = vpop.eup %2078  ;;  %2092 = vrsqrt.f32 %v2673_v41  ;;  %v429_v62 = vsel %vm427_vm7, %v428_v48, %v426_v42  ;;  %v449_v42 = vand.u32 2147483648, %v2659_v24 }
  0xb0   : > { %v2081_v51 = vpop.eup %2080  ;;  %v415_v54 = vsel %vm413_vm6, %v414_v46, %v412_v43  ;;  %v417_v55 = vmul.f32 %v2079_v47, %v318_v21  ;;  %v651_v14 = vmax.f32 %v429_v62, 1e-12  ;;  %vm474_vm5 = vcmp.eq.f32.partialorder %v2671_v40, inf }
  0xb1   : > { %v2677_v56 = vpop.xlane.xlu1 %347  ;;  %v2679_v57 = vpop.xlane.xlu0 %344  ;;  %v649_v5 = vmax.f32 %v415_v54, 1e-12  ;;  %v431_v11 = vmul.f32 %v2081_v51, %v2656_v20  ;;  %v442_v51 = vand.u32 2147483648, %v2661_v27  ;;  %vm476_vm6 = vcmp.eq.f32.partialorder %v2671_v40, 0.0 }
  0xb2   : > { %v419_v3 = vsel %vm418_vm8, %v318_v21, %v417_v55  ;;  %2094 = vrsqrt.f32 %v2677_v56  ;;  %v435_v21 = vand.u32 2147483648, %v2656_v20  ;;  %vm467_vm7 = vcmp.eq.f32.partialorder %v2673_v41, inf }
  0xb3   : > { %v2083_v4 = vpop.eup %2082  ;;  %v422_v12 = vsel %vm420_vm9, %v421_v63, %v419_v3  ;;  %2096 = vrsqrt.f32 %v2679_v57  ;;  %v433_v46 = vsel %vm432_vm10, %v2656_v20, %v431_v11  ;;  %v456_v20 = vand.u32 2147483648, %v2667_v31 }
  0xb4   : > { %v2085_v13 = vpop.eup %2084  ;;  %v438_v19 = vmul.f32 %v2083_v4, %v2661_v27  ;;  %v650_v34 = vmax.f32 %v422_v12, 1e-12  ;;  %2098 = vrcp.f32 %v649_v5  ;;  %v436_v3 = vsel %vm434_vm11, %v435_v21, %v433_v46 }
  0xb5   : > { %v2685_v32 = vpop.xlane.xlu1 %353  ;;  %v2687_v33 = vpop.xlane.xlu0 %350  ;;  %v445_v47 = vmul.f32 %v2085_v13, %v2659_v24  ;;  %2100 = vrcp.f32 %v651_v14  ;;  %v463_v4 = vand.u32 2147483648, %v2665_v30  ;;  %v652_v21 = vmax.f32 %v436_v3, 1e-12 }
  0xb6   : > { %v440_v48 = vsel %vm439_vm14, %v2661_v27, %v438_v19  ;;  %2102 = vrcp.f32 %v650_v34  ;;  %vm469_vm8 = vcmp.eq.f32.partialorder %v2673_v41, 0.0  ;;  %vm488_vm9 = vcmp.eq.f32.partialorder %v2677_v56, inf }
  0xb7   : > { %v2087_v38 = vpop.eup %2086  ;;  %2104 = vrsqrt.f32 %v2685_v32  ;;  %v447_v11 = vsel %vm446_vm12, %v2659_v24, %v445_v47  ;;  %v443_v12 = vsel %vm441_vm15, %v442_v51, %v440_v48  ;;  %v470_v48 = vand.u32 2147483648, %v2673_v41 }
  0xb8   : > { %v2089_v43 = vpop.eup %2088  ;;  %v459_v62 = vmul.f32 %v2087_v38, %v2665_v30  ;;  %2106 = vrsqrt.f32 %v2687_v33  ;;  %v477_v38 = vand.u32 2147483648, %v2671_v40  ;;  %v653_v46 = vmax.f32 %v443_v12, 1e-12 }
  0xb9   : > { %v2702_v54 = vpop.xlane.xlu1 %359  ;;  %v2704_v55 = vpop.xlane.xlu0 %356  ;;  %v452_v63 = vmul.f32 %v2089_v43, %v2667_v31  ;;  %v450_v43 = vsel %vm448_vm13, %v449_v42, %v447_v11  ;;  %vm490_vm10 = vcmp.eq.f32.partialorder %v2677_v56, 0.0  ;;  %vm481_vm11 = vcmp.eq.f32.partialorder %v2679_v57, inf }
  0xba   : > { %2108 = vrsqrt.f32 %v2702_v54  ;;  %v461_v27 = vsel %vm460_vm1, %v2665_v30, %v459_v62  ;;  %v654_v11 = vmax.f32 %v450_v43, 1e-12  ;;  %vm483_vm12 = vcmp.eq.f32.partialorder %v2679_v57, 0.0 }
  0xbb   : > { %v2091_v5 = vpop.eup %2090  ;;  %v454_v34 = vsel %vm453_vm3, %v2667_v31, %v452_v63  ;;  %2110 = vrsqrt.f32 %v2704_v55  ;;  %v464_v62 = vsel %vm462_vm2, %v463_v4, %v461_v27  ;;  %v491_v31 = vand.u32 2147483648, %v2677_v56 }
  0xbc   : > { %v2093_v19 = vpop.eup %2092  ;;  %v473_v47 = vmul.f32 %v2091_v5, %v2671_v40  ;;  %v457_v24 = vsel %vm455_vm4, %v456_v20, %v454_v34  ;;  %v656_v4 = vmax.f32 %v464_v62, 1e-12  ;;  %v484_v62 = vand.u32 2147483648, %v2679_v57 }
  0xbd   : > { %v2725_v13 = vpop.xlane.xlu1 %365  ;;  %v2727_v14 = vpop.xlane.xlu0 %362  ;;  %v466_v42 = vmul.f32 %v2093_v19, %v2673_v41  ;;  %v655_v20 = vmax.f32 %v457_v24, 1e-12  ;;  %vm502_vm13 = vcmp.eq.f32.partialorder %v2685_v32, inf  ;;  %vm495_vm14 = vcmp.eq.f32.partialorder %v2687_v33, inf }
  0xbe   : > { %2112 = vrsqrt.f32 %v2725_v13  ;;  %v475_v30 = vsel %vm474_vm5, %v2671_v40, %v473_v47  ;;  %vm497_vm15 = vcmp.eq.f32.partialorder %v2687_v33, 0.0  ;;  %vm516_vm1 = vcmp.eq.f32.partialorder %v2702_v54, inf }
  0xbf   : > { %v2095_v51 = vpop.eup %2094  ;;  %2114 = vrcp.f32 %v652_v21  ;;  %v468_v21 = vsel %vm467_vm7, %v2673_v41, %v466_v42  ;;  %v519_v49 = vand.u32 2147483648, %v2702_v54  ;;  %vm509_vm2 = vcmp.eq.f32.partialorder %v2704_v55, inf }
  0xc0   : > { %v2097_v5 = vpop.eup %2096  ;;  %v487_v12 = vmul.f32 %v2095_v51, %v2677_v56  ;;  %2116 = vrcp.f32 %v653_v46  ;;  %v478_v51 = vsel %vm476_vm6, %v477_v38, %v475_v30  ;;  %v471_v40 = vsel %vm469_vm8, %v470_v48, %v468_v21 }
  0xc1   : > { %v2750_v63 = vpop.xlane.xlu1 %371  ;;  %v2752_v3 = vpop.xlane.xlu0 %368  ;;  %2118 = vrsqrt.f32 %v2727_v14  ;;  %v480_v34 = vmul.f32 %v2097_v5, %v2679_v57  ;;  %v498_v5 = vand.u32 2147483648, %v2687_v33  ;;  %v658_v24 = vmax.f32 %v478_v51, 1e-12 }
  0xc2   : > { %v2099_v19 = vpop.eup %2098  ;;  %v489_v27 = vsel %vm488_vm9, %v2677_v56, %v487_v12  ;;  %2120 = vrsqrt.f32 %v2750_v63  ;;  %vm511_vm3 = vcmp.eq.f32.partialorder %v2704_v55, 0.0  ;;  %v657_v56 = vmax.f32 %v471_v40, 1e-12 }
  0xc3   : > { %v2101_v47 = vpop.eup %2100  ;;  %2122 = vrcp.f32 %v654_v11  ;;  %v492_v38 = vsel %vm490_vm10, %v491_v31, %v489_v27  ;;  %v682_v11 = vmul.f32 %v2099_v19, %v2451_v1  ;;  %v482_v58 = vsel %vm481_vm11, %v2679_v57, %v480_v34 }
  0xc4   : > { %v2103_v42 = vpop.eup %2102  ;;  %2124 = vrsqrt.f32 %v2752_v3  ;;  %v660_v31 = vmax.f32 %v492_v38, 1e-12  ;;  %vm504_vm4 = vcmp.eq.f32.partialorder %v2685_v32, 0.0  ;;  %vm518_vm5 = vcmp.eq.f32.partialorder %v2702_v54, 0.0 }
  0xc5   : > { %v2771_v43 = vpop.xlane.xlu1 %377  ;;  %v2773_v46 = vpop.xlane.xlu0 %374  ;;  %2126 = vrcp.f32 %v656_v4  ;;  %2013 = vmatprep.mubr.msk.f32.mxu0 %vm312_vm0, %v682_v11  ;;  %v485_v19 = vsel %vm483_vm12, %v484_v62, %v482_v58  ;;  %v684_v34 = vmul.f32 %v2103_v42, %v2463_v6  ;;  %vm530_vm6 = vcmp.eq.f32.partialorder %v2725_v13, inf }
  0xc6   : > { %v2105_v12 = vpop.eup %2104  ;;  %2128 = vrcp.f32 %v655_v20  ;;  %v512_v20 = vand.u32 2147483648, %v2704_v55  ;;  %v686_v38 = vmul.f32 %v2101_v47, %v2448_v0  ;;  %v533_v62 = vand.u32 2147483648, %v2725_v13 }
  0xc7   : > { %v2107_v30 = vpop.eup %2106  ;;  %2130 = vrsqrt.f32 %v2771_v43  ;;  %v501_v21 = vmul.f32 %v2105_v12, %v2685_v32  ;;  %2014 = vmatmul.mubr.msk.f32.vlgmr.msra.gmra.mxu0 %vm312_vm0, %v684_v34  ;;  %v659_v42 = vmax.f32 %v485_v19, 1e-12  ;;  %vm532_vm7 = vcmp.eq.f32.partialorder %v2725_v13, 0.0 }
  0xc8   : > { %v2109_v41 = vpop.eup %2108  ;;  %v494_v48 = vmul.f32 %v2107_v30, %v2687_v33  ;;  %2132 = vrsqrt.f32 %v2773_v46  ;;  %vm523_vm8 = vcmp.eq.f32.partialorder %v2727_v14, inf  ;;  %vm525_vm9 = vcmp.eq.f32.partialorder %v2727_v14, 0.0  ;;  %2016 = vmatprep.mubr.msk.f32.mxu0 %vm312_vm0, %v686_v38 }
  0xc9   : > { %v2794_v4 = vpop.xlane.xlu1 %383  ;;  %v2801_v1 = vpop.xlane.xlu0 %380  ;;  %2134 = vrcp.f32 %v658_v24  ;;  %v515_v40 = vmul.f32 %v2109_v41, %v2702_v54  ;;  %vm544_vm10 = vcmp.eq.f32.partialorder %v2750_v63, inf  ;;  %vm537_vm11 = vcmp.eq.f32.partialorder %v2752_v3, inf }
  0xca   : > { %v496_v27 = vsel %vm495_vm14, %v2687_v33, %v494_v48  ;;  %v2111_v51 = vpop.eup %2110  ;;  %2136 = vrsqrt.f32 %v2794_v4  ;;  %v503_v33 = vsel %vm502_vm13, %v2685_v32, %v501_v21  ;;  %vm546_vm12 = vcmp.eq.f32.partialorder %v2750_v63, 0.0 }
  0xcb   : > { %v2113_v11 = vpop.eup %2112  ;;  %v499_v58 = vsel %vm497_vm15, %v498_v5, %v496_v27  ;;  %v508_v57 = vmul.f32 %v2111_v51, %v2704_v55  ;;  %2138 = vrcp.f32 %v657_v56  ;;  %v526_v5 = vand.u32 2147483648, %v2727_v14 }
  0xcc   : > { %v2115_v24 = vpop.eup %2114  ;;  %2140 = vrcp.f32 %v660_v31  ;;  %v661_v41 = vmax.f32 %v499_v58, 1e-12  ;;  %v517_v48 = vsel %vm516_vm1, %v2702_v54, %v515_v40  ;;  %v529_v31 = vmul.f32 %v2113_v11, %v2725_v13 }
  0xcd   : > { %v2823_v6 = vpop.xlane.xlu1 %389  ;;  %v2117_v0 = vpop.eup %2116  ;;  %v510_v47 = vsel %vm509_vm2, %v2704_v55, %v508_v57  ;;  %v547_v27 = vand.u32 2147483648, %v2750_v63  ;;  %2142 = vrsqrt.f32 %v2801_v1  ;;  %v688_v51 = vmul.f32 %v2115_v24, %v2454_v2 }
  0xce   : > { %v2836_v12 = vpop.xlane.xlu0 %386  ;;  %v2119_v30 = vpop.eup %2118  ;;  %v513_v56 = vsel %vm511_vm3, %v512_v20, %v510_v47  ;;  %2144 = vrcp.f32 %v659_v42  ;;  %v690_v55 = vmul.f32 %v2117_v0, %v2471_v9  ;;  %v3591_v40 = vand.u32 2147483648, %v2685_v32 }
  0xcf   : > { %v2121_v19 = vpop.eup %2120  ;;  %v522_v21 = vmul.f32 %v2119_v30, %v2727_v14  ;;  %v520_v11 = vsel %vm518_vm5, %v519_v49, %v517_v48  ;;  %v663_v58 = vmax.f32 %v513_v56, 1e-12  ;;  %2146 = vrcp.f32 %v661_v41  ;;  %2017 = vmatmul.mubr.msk.f32.gmra.mxu0 %vm312_vm0, %v688_v51 }
  0xd0   : > { %v2123_v34 = vpop.eup %2122  ;;  %v506_v38 = vsel %vm504_vm4, %v3591_v40, %v503_v33  ;;  %v531_v9 = vsel %vm530_vm6, %v2725_v13, %v529_v31  ;;  %v543_v32 = vmul.f32 %v2121_v19, %v2750_v63  ;;  %vm539_vm13 = vcmp.eq.f32.partialorder %v2752_v3, 0.0  ;;  %2019 = vmatprep.mubr.msk.f32.mxu0 %vm312_vm0, %v690_v55 }
  0xd1   : > { %v2125_v20 = vpop.eup %2124  ;;  %v524_v57 = vsel %vm523_vm8, %v2727_v14, %v522_v21  ;;  %v2861_v42 = vpop.xlane.xlu1 %395  ;;  %v540_v0 = vand.u32 2147483648, %v2752_v3  ;;  %2148 = vrsqrt.f32 %v2823_v6  ;;  %v662_v30 = vmax.f32 %v506_v38, 1e-12 }
  0xd2   : > { %v2127_v2 = vpop.eup %2126  ;;  %v536_v54 = vmul.f32 %v2125_v20, %v2752_v3  ;;  %v527_v24 = vsel %vm525_vm9, %v526_v5, %v524_v57  ;;  %v2875_v33 = vpop.xlane.xlu0 %392  ;;  %vm558_vm14 = vcmp.eq.f32.partialorder %v2771_v43, inf  ;;  %2150 = vrsqrt.f32 %v2836_v12 }
  0xd3   : > { %v2129_v49 = vpop.eup %2128  ;;  %v664_v5 = vmax.f32 %v520_v11, 1e-12  ;;  %2152 = vrcp.f32 %v663_v58  ;;  %v534_v48 = vsel %vm532_vm7, %v533_v62, %v531_v9  ;;  %vm560_vm15 = vcmp.eq.f32.partialorder %v2771_v43, 0.0 }
  0xd4   : > { %v2131_v47 = vpop.eup %2130  ;;  %v538_v41 = vsel %vm537_vm11, %v2752_v3, %v536_v54  ;;  %v561_v56 = vand.u32 2147483648, %v2771_v43  ;;  %v665_v31 = vmax.f32 %v527_v24, 1e-12  ;;  %v545_v19 = vsel %vm544_vm10, %v2750_v63, %v543_v32 }
  0xd5   : > { %v2133_v14 = vpop.eup %2132  ;;  %v541_v21 = vsel %vm539_vm13, %v540_v0, %v538_v41  ;;  %v557_v20 = vmul.f32 %v2131_v47, %v2771_v43  ;;  %v692_v13 = vmul.f32 %v2123_v34, %v2468_v8  ;;  %v694_v62 = vmul.f32 %v2129_v49, %v2485_v17  ;;  %v2896_v40 = vpop.xlane.xlu1 %401 }
  0xd6   : > { %v550_v51 = vmul.f32 %v2133_v14, %v2773_v46  ;;  %v2135_v55 = vpop.eup %2134  ;;  %2154 = vrsqrt.f32 %v2861_v42  ;;  %v666_v11 = vmax.f32 %v534_v48, 1e-12  ;;  %vm551_vm1 = vcmp.eq.f32.partialorder %v2773_v46, inf  ;;  %v2904_v8 = vpop.xlane.xlu0 %398 }
  0xd7   : > { %v2137_v38 = vpop.eup %2136  ;;  %2156 = vrcp.f32 %v662_v30  ;;  %vm553_vm2 = vcmp.eq.f32.partialorder %v2773_v46, 0.0  ;;  %v554_v57 = vand.u32 2147483648, %v2773_v46  ;;  %vm572_vm3 = vcmp.eq.f32.partialorder %v2794_v4, inf  ;;  %2020 = vmatmul.mubr.msk.f32.gmra.mxu0 %vm312_vm0, %v692_v13 }
  0xd8   : > { %v2139_v3 = vpop.eup %2138  ;;  %2158 = vrcp.f32 %v664_v5  ;;  %v552_v58 = vsel %vm551_vm1, %v2773_v46, %v550_v51  ;;  %v548_v34 = vsel %vm546_vm12, %v547_v27, %v545_v19  ;;  %v667_v9 = vmax.f32 %v541_v21, 1e-12  ;;  %2022 = vmatprep.mubr.msk.f32.mxu0 %vm312_vm0, %v694_v62 }
  0xd9   : > { %v2141_v17 = vpop.eup %2140  ;;  %vm574_vm4 = vcmp.eq.f32.partialorder %v2794_v4, 0.0  ;;  %2160 = vrsqrt.f32 %v2875_v33  ;;  %v559_v32 = vsel %vm558_vm14, %v2771_v43, %v557_v20  ;;  %v571_v54 = vmul.f32 %v2137_v38, %v2794_v4  ;;  %v2923_v14 = vpop.xlane.xlu1 %407 }
  0xda   : > { %2162 = vrcp.f32 %v665_v31  ;;  %v575_v49 = vand.u32 2147483648, %v2794_v4  ;;  %v2143_v24 = vpop.eup %2142  ;;  %v555_v63 = vsel %vm553_vm2, %v554_v57, %v552_v58  ;;  %vm565_vm5 = vcmp.eq.f32.partialorder %v2801_v1, inf  ;;  %v2938_v43 = vpop.xlane.xlu0 %404 }
  0xdb   : > { %2164 = vrcp.f32 %v666_v11  ;;  %v696_v27 = vmul.f32 %v2127_v2, %v2482_v16  ;;  %v2145_v0 = vpop.eup %2144  ;;  %v668_v47 = vmax.f32 %v548_v34, 1e-12  ;;  %v564_v30 = vmul.f32 %v2143_v24, %v2801_v1 }
  0xdc   : > { %v698_v41 = vmul.f32 %v2139_v3, %v2498_v23  ;;  %2166 = vrsqrt.f32 %v2896_v40  ;;  %v562_v5 = vsel %vm560_vm15, %v561_v56, %v559_v32  ;;  %vm567_vm6 = vcmp.eq.f32.partialorder %v2801_v1, 0.0  ;;  %v2147_v16 = vpop.eup %2146 }
  0xdd   : > { %2168 = vrcp.f32 %v667_v9  ;;  %v568_v46 = vand.u32 2147483648, %v2801_v1  ;;  %2023 = vmatmul.mubr.msk.f32.gmra.mxu0 %vm312_vm0, %v696_v27  ;;  %v669_v2 = vmax.f32 %v555_v63, 1e-12  ;;  %v573_v23 = vsel %vm572_vm3, %v2794_v4, %v571_v54 }
  0xde   : > { %v566_v48 = vsel %vm565_vm5, %v2801_v1, %v564_v30  ;;  %2025 = vmatprep.mubr.msk.f32.mxu0 %vm312_vm0, %v698_v41  ;;  %2170 = vrsqrt.f32 %v2904_v8  ;;  %v2149_v56 = vpop.eup %2148  ;;  %v700_v19 = vmul.f32 %v2135_v55, %v2495_v22  ;;  %v702_v21 = vmul.f32 %v2145_v0, %v2517_v29 }
  0xdf   : > { %v569_v31 = vsel %vm567_vm6, %v568_v46, %v566_v48  ;;  %2172 = vrsqrt.f32 %v2923_v14  ;;  %v2151_v51 = vpop.eup %2150  ;;  %v585_v20 = vmul.f32 %v2149_v56, %v2823_v6  ;;  %vm586_vm7 = vcmp.eq.f32.partialorder %v2823_v6, inf }
  0xe0   : > { %2174 = vrcp.f32 %v668_v47  ;;  %vm579_vm8 = vcmp.eq.f32.partialorder %v2836_v12, inf  ;;  %v2153_v1 = vpop.eup %2152  ;;  %v578_v13 = vmul.f32 %v2151_v51, %v2836_v12  ;;  %vm581_vm9 = vcmp.eq.f32.partialorder %v2836_v12, 0.0 }
  0xe1   : > { %v582_v62 = vand.u32 2147483648, %v2836_v12  ;;  %2026 = vmatmul.mubr.msk.f32.gmra.mxu0 %vm312_vm0, %v700_v19  ;;  %2176 = vrsqrt.f32 %v2938_v43  ;;  %v670_v22 = vmax.f32 %v562_v5, 1e-12  ;;  %v576_v29 = vsel %vm574_vm4, %v575_v49, %v573_v23 }
  0xe2   : > { %2178 = vrcp.f32 %v669_v2  ;;  %v671_v55 = vmax.f32 %v569_v31, 1e-12  ;;  %2028 = vmatprep.mubr.msk.f32.mxu0 %vm312_vm0, %v702_v21  ;;  %v587_v11 = vsel %vm586_vm7, %v2823_v6, %v585_v20  ;;  %v580_v3 = vsel %vm579_vm8, %v2836_v12, %v578_v13 }
  0xe3   : > { %v2155_v38 = vpop.eup %2154  ;;  %v704_v58 = vmul.f32 %v2141_v17, %v2514_v28  ;;  %v706_v57 = vmul.f32 %v2147_v16, %v2534_v37  ;;  %vm588_vm10 = vcmp.eq.f32.partialorder %v2823_v6, 0.0  ;;  %v589_v9 = vand.u32 2147483648, %v2823_v6 }
  0xe4   : > { %v2157_v34 = vpop.eup %2156  ;;  %v583_v4 = vsel %vm581_vm9, %v582_v62, %v580_v3  ;;  %v672_v54 = vmax.f32 %v576_v29, 1e-12  ;;  %v599_v49 = vmul.f32 %v2155_v38, %v2861_v42  ;;  %vm600_vm11 = vcmp.eq.f32.partialorder %v2861_v42, inf }
  0xe5   : > { %v2159_v32 = vpop.eup %2158  ;;  %vm602_vm12 = vcmp.eq.f32.partialorder %v2861_v42, 0.0  ;;  %2029 = vmatmul.mubr.msk.f32.gmra.mxu0 %vm312_vm0, %v704_v58  ;;  %2180 = vrcp.f32 %v671_v55  ;;  %v590_v37 = vsel %vm588_vm10, %v589_v9, %v587_v11  ;;  %v673_v17 = vmax.f32 %v583_v4, 1e-12 }
  0xe6   : > { %v2161_v28 = vpop.eup %2160  ;;  %2031 = vmatprep.mubr.msk.f32.mxu0 %vm312_vm0, %v706_v57  ;;  %v710_v6 = vmul.f32 %v2153_v1, %v2547_v45  ;;  %2182 = vrcp.f32 %v670_v22  ;;  %v603_v24 = vand.u32 2147483648, %v2861_v42  ;;  %v708_v27 = vmul.f32 %v2157_v34, %v2531_v36 }
  0xe7   : > { %v2163_v12 = vpop.eup %2162  ;;  %v592_v63 = vmul.f32 %v2161_v28, %v2875_v33  ;;  %vm593_vm13 = vcmp.eq.f32.partialorder %v2875_v33, inf  ;;  %vm595_vm14 = vcmp.eq.f32.partialorder %v2875_v33, 0.0  ;;  %v596_v47 = vand.u32 2147483648, %v2875_v33 }
  0xe8   : > { %v2165_v0 = vpop.eup %2164  ;;  %vm614_vm15 = vcmp.eq.f32.partialorder %v2896_v40, inf  ;;  %2184 = vrcp.f32 %v672_v54  ;;  %v674_v45 = vmax.f32 %v590_v37, 1e-12  ;;  %v601_v41 = vsel %vm600_vm11, %v2861_v42, %v599_v49 }
  0xe9   : > { %v2167_v30 = vpop.eup %2166  ;;  %v594_v5 = vsel %vm593_vm13, %v2875_v33, %v592_v63  ;;  %2032 = vmatmul.mubr.msk.f32.gmra.mxu0 %vm312_vm0, %v708_v27  ;;  %2186 = vrcp.f32 %v673_v17  ;;  %v714_v2 = vmul.f32 %v2163_v12, %v2559_v53  ;;  %vm616_vm1 = vcmp.eq.f32.partialorder %v2896_v40, 0.0 }
  0xea   : > { %v2169_v36 = vpop.eup %2168  ;;  %v597_v46 = vsel %vm595_vm14, %v596_v47, %v594_v5  ;;  %v613_v16 = vmul.f32 %v2167_v30, %v2896_v40  ;;  %2034 = vmatprep.mubr.msk.f32.mxu0 %vm312_vm0, %v710_v6  ;;  %v617_v56 = vand.u32 2147483648, %v2896_v40  ;;  %v712_v31 = vmul.f32 %v2159_v32, %v2544_v44  ;;  %v3592_v47 = vld [vmem:[#allocation2_spill] sm:$0xff] }
  0xeb   : > { %v2171_v23 = vpop.eup %2170  ;;  %v675_v48 = vmax.f32 %v597_v46, 1e-12  ;;  %v604_v19 = vsel %vm602_vm12, %v603_v24, %v601_v41  ;;  %vm607_vm2 = vcmp.eq.f32.partialorder %v2904_v8, inf  ;;  %vm609_vm3 = vcmp.eq.f32.partialorder %v2904_v8, 0.0 }
  0xec   : > { %v2173_v33 = vpop.eup %2172  ;;  %v606_v21 = vmul.f32 %v2171_v23, %v2904_v8  ;;  %2188 = vrcp.f32 %v674_v45  ;;  %v615_v53 = vsel %vm614_vm15, %v2896_v40, %v613_v16  ;;  %v610_v20 = vand.u32 2147483648, %v2904_v8  ;;  %v3593_v45 = vld [vmem:[#allocation3_spill] sm:$0xff] }
  0xed   : > { %v2175_v51 = vpop.eup %2174  ;;  %v627_v44 = vmul.f32 %v2173_v33, %v2923_v14  ;;  %2035 = vmatmul.mubr.msk.f32.gmra.mxu0 %vm312_vm0, %v712_v31  ;;  %2190 = vrcp.f32 %v675_v48  ;;  %vm628_vm4 = vcmp.eq.f32.partialorder %v2923_v14, inf  ;;  %v718_v13 = vmul.f32 %v2169_v36, %v2571_v61 }
  0xee   : > { %v2177_v42 = vpop.eup %2176  ;;  %v608_v1 = vsel %vm607_vm2, %v2904_v8, %v606_v21  ;;  %2037 = vmatprep.mubr.msk.f32.mxu0 %vm312_vm0, %v714_v2  ;;  %v676_v22 = vmax.f32 %v604_v19, 1e-12  ;;  %v716_v38 = vmul.f32 %v2165_v0, %v2556_v52  ;;  %v618_v11 = vsel %vm616_vm1, %v617_v56, %v615_v53 }
  0xef   : > { %v2179_v62 = vpop.eup %2178  ;;  %v611_v29 = vsel %vm609_vm3, %v610_v20, %v608_v1  ;;  %v620_v55 = vmul.f32 %v2177_v42, %v2938_v43  ;;  %vm621_vm5 = vcmp.eq.f32.partialorder %v2938_v43, inf  ;;  %v624_v8 = vand.u32 2147483648, %v2938_v43 }
  0xf0   : > { %v677_v3 = vmax.f32 %v611_v29, 1e-12  ;;  %v629_v58 = vsel %vm628_vm4, %v2923_v14, %v627_v44  ;;  %vm630_vm6 = vcmp.eq.f32.partialorder %v2923_v14, 0.0  ;;  %vm623_vm7 = vcmp.eq.f32.partialorder %v2938_v43, 0.0 }
  0xf1   : > { %v622_v61 = vsel %vm621_vm5, %v2938_v43, %v620_v55  ;;  %2038 = vmatmul.mubr.msk.f32.gmra.mxu0 %vm312_vm0, %v716_v38  ;;  %v631_v52 = vand.u32 2147483648, %v2923_v14  ;;  %v722_v57 = vmul.f32 %v2179_v62, %v2583_v10  ;;  %v678_v9 = vmax.f32 %v618_v11, 1e-12 }
  0xf2   : > { %2192 = vrcp.f32 %v677_v3  ;;  %v625_v40 = vsel %vm623_vm7, %v624_v8, %v622_v61  ;;  %2040 = vmatprep.mubr.msk.f32.mxu0 %vm312_vm0, %v718_v13  ;;  %v2181_v34 = vpop.eup %2180  ;;  %v720_v32 = vmul.f32 %v2175_v51, %v2568_v60 }
  0xf3   : > { %2194 = vrcp.f32 %v676_v22  ;;  %v679_v4 = vmax.f32 %v625_v40, 1e-12  ;;  %v2183_v54 = vpop.eup %2182  ;;  %v632_v49 = vsel %vm630_vm6, %v631_v52, %v629_v58  ;;  %v726_v14 = vmul.f32 %v2181_v34, %v2595_v18 }
  0xf4   : > { %v680_v37 = vmax.f32 %v632_v49, 1e-12  ;;  %v724_v10 = vmul.f32 %v2183_v54, %v2580_v7 }
  0xf5   : > { %2041 = vmatmul.mubr.msk.f32.gmra.mxu0 %vm312_vm0, %v720_v32  ;;  %v2185_v43 = vpop.eup %2184  ;;  %2196 = vrcp.f32 %v679_v4 }
  0xf6   : > { %2043 = vmatprep.mubr.msk.f32.mxu0 %vm312_vm0, %v722_v57  ;;  %v2187_v28 = vpop.eup %2186  ;;  %2198 = vrcp.f32 %v678_v9  ;;  %v728_v12 = vmul.f32 %v2185_v43, %v2592_v15 }
  0xf7   : > { %v730_v60 = vmul.f32 %v2187_v28, %v2607_v26  ;;  %2200 = vrcp.f32 %v680_v37 }
  0xf9   : > { %2044 = vmatmul.mubr.msk.f32.gmra.mxu0 %vm312_vm0, %v724_v10  ;;  %v2189_v17 = vpop.eup %2188 }
  0xfa   : > { %2046 = vmatprep.mubr.msk.f32.mxu0 %vm312_vm0, %v726_v14  ;;  %v2191_v6 = vpop.eup %2190  ;;  %v732_v7 = vmul.f32 %v2189_v17, %v2604_v25 }
  0xfb   : > { %v734_v18 = vmul.f32 %v2191_v6, %v2619_v39 }
  0xfd   : > { %2047 = vmatmul.mubr.msk.f32.gmra.mxu0 %vm312_vm0, %v728_v12 }
  0xfe   : > { %2049 = vmatprep.mubr.msk.f32.mxu0 %vm312_vm0, %v730_v60 }
  0xff   : > { %v2193_v24 = vpop.eup %2192 }
 0x100   : > { %v2195_v63 = vpop.eup %2194  ;;  %v738_v26 = vmul.f32 %v2193_v24, %v2631_v50  ;;  %v2396_v50 = vld [vmem:[%s2505_s24] sm:$0xf] }
 0x101   : > { %2050 = vmatmul.mubr.msk.f32.gmra.mxu0 %vm312_vm0, %v732_v7  ;;  %v736_v15 = vmul.f32 %v2195_v63, %v2616_v35 }
 0x102   : > { %2052 = vmatprep.mubr.msk.f32.mxu0 %vm312_vm0, %v734_v18  ;;  %v2197_v27 = vpop.eup %2196 }
 0x103   : > { %v2199_v0 = vpop.eup %2198  ;;  %v742_v39 = vmul.f32 %v2197_v27, %v2643_v59 }
 0x104   : > { %v740_v25 = vmul.f32 %v2199_v0, %v3592_v47  ;;  %v2201_v30 = vpop.eup %2200 }
 0x105   : > { %2053 = vmatmul.mubr.msk.f32.gmra.mxu0 %vm312_vm0, %v736_v15  ;;  %v744_v41 = vmul.f32 %v2201_v30, %v3593_v45 }
 0x106   : > { %2055 = vmatprep.mubr.msk.f32.mxu0 %vm312_vm0, %v738_v26 }
 0x109   : > { %2056 = vmatmul.mubr.msk.f32.gmra.mxu0 %vm312_vm0, %v740_v25 }
 0x10a   : > { %2058 = vmatprep.mubr.msk.f32.mxu0 %vm312_vm0, %v742_v39 }
 0x10d   : > { %2059 = vmatmul.mubr.msk.f32.gmra.mxu0 %vm312_vm0, %v744_v41 }
 0x10e   : > { %2009 = vmatprep.mubr.f32.mxu0 %v2396_v50 }
 0x187   : > { %v2015_v35 = vpop.f32.mrf.mxu0 }
 0x188   : > { %v3062_v40 = vsub.f32 0.0, %v2015_v35 }
 0x189   : > { %v913_v5 = vpop.f32.mrf.mxu0 }
 0x18a   : > { %3594 = vst [vmem:[#allocation2_spill] sm:$0xff] %v3062_v40  ;;  %v3064_v57 = vsub.f32 0.0, %v913_v5 }
 0x18c   : > { %3595 = vst [vmem:[#allocation3_spill] sm:$0xff] %v3064_v57 }
 0x18f   : > { %v2018_v36 = vpop.f32.mrf.mxu0 }
 0x190   : > { %v3068_v4 = vsub.f32 0.0, %v2018_v36 }
 0x191   : > { %v923_v46 = vpop.f32.mrf.mxu0 }
 0x192   : > { %v3076_v43 = vsub.f32 0.0, %v923_v46 }
 0x197   : > { %v2021_v16 = vpop.f32.mrf.mxu0 }
 0x198   : > { %v3055_v58 = vsub.f32 0.0, %v2021_v16 }
 0x199   : > { %v933_v2 = vpop.f32.mrf.mxu0 }
 0x19a   : > { %v3057_v61 = vsub.f32 0.0, %v933_v2  ;;  %v1105_v28 = vmax.f32 %v3062_v40, %v3055_v58 }
 0x19c   : > { %v1104_v37 = vmax.f32 %v3064_v57, %v3057_v61 }
 0x19d   : > { %v2024_v59 = vpop.f32.mrf.mxu0 }
 0x19e   : > { %v3059_v52 = vsub.f32 0.0, %v2024_v59 }
 0x19f   : > { %v943_v23 = vpop.f32.mrf.mxu0 }
 0x1a0   : > { %v3066_v34 = vsub.f32 0.0, %v943_v23  ;;  %v1107_v10 = vmax.f32 %v3068_v4, %v3059_v52 }
 0x1a1   : > { %v2027_v48 = vpop.f32.mrf.mxu0 }
 0x1a2   : > { %v3070_v32 = vsub.f32 0.0, %v2027_v48  ;;  %v1106_v17 = vmax.f32 %v3076_v43, %v3066_v34 }
 0x1a3   : > { %v953_v56 = vpop.f32.mrf.mxu0 }
 0x1a4   : > { %v3072_v54 = vsub.f32 0.0, %v953_v56  ;;  %v1109_v6 = vmax.f32 %v1105_v28, %v3070_v32 }
 0x1a5   : > { %v2030_v31 = vpop.f32.mrf.mxu0 }
 0x1a6   : > { %v3053_v3 = vsub.f32 0.0, %v2030_v31  ;;  %v1108_v12 = vmax.f32 %v1104_v37, %v3072_v54 }
 0x1a7   : > { %v963_v33 = vpop.f32.mrf.mxu0 }
 0x1a8   : > { %v3074_v49 = vsub.f32 0.0, %v963_v33  ;;  %v1111_v18 = vmax.f32 %v1107_v10, %v3053_v3 }
 0x1a9   : > { %v2033_v19 = vpop.f32.mrf.mxu0 }
 0x1aa   : > { %v3047_v62 = vsub.f32 0.0, %v2033_v19  ;;  %v1110_v7 = vmax.f32 %v1106_v17, %v3074_v49 }
 0x1ab   : > { %v973_v21 = vpop.f32.mrf.mxu0 }
 0x1ac   : > { %v3050_v55 = vsub.f32 0.0, %v973_v21  ;;  %v1113_v0 = vmax.f32 %v1109_v6, %v3047_v62 }
 0x1ad   : > { %v2036_v51 = vpop.f32.mrf.mxu0 }
 0x1ae   : > { %v3041_v53 = vsub.f32 0.0, %v2036_v51  ;;  %v1112_v39 = vmax.f32 %v1108_v12, %v3050_v55 }
 0x1af   : > { %v983_v20 = vpop.f32.mrf.mxu0 }
 0x1b0   : > { %1337 = vmax.xlane.f32.xlu1 %v3041_v53  ;;  %v3044_v42 = vsub.f32 0.0, %v983_v20  ;;  %v1115_v25 = vmax.f32 %v1111_v18, %v3041_v53 }
 0x1b1   : > { %v2039_v44 = vpop.f32.mrf.mxu0 }
 0x1b2   : > { %v3093_v63 = vsub.f32 0.0, %v2039_v44  ;;  %v1114_v30 = vmax.f32 %v1110_v7, %v3044_v42 }
 0x1b3   : > { %v993_v1 = vpop.f32.mrf.mxu0 }
 0x1b4   : > { %1335 = vmax.xlane.f32.xlu1 %v3044_v42  ;;  %v3090_v24 = vsub.f32 0.0, %v993_v1  ;;  %3597 = vst [vmem:[#allocation5_spill] sm:$0xff] %v3093_v63  ;;  %v1117_v46 = vmax.f32 %v1113_v0, %v3093_v63 }
 0x1b5   : > { %v2042_v13 = vpop.f32.mrf.mxu0 }
 0x1b6   : > { %3596 = vst [vmem:[#allocation4_spill] sm:$0xff] %v3090_v24  ;;  %v3095_v26 = vsub.f32 0.0, %v2042_v13  ;;  %v1116_v35 = vmax.f32 %v1112_v39, %v3090_v24 }
 0x1b7   : > { %v1003_v22 = vpop.f32.mrf.mxu0 }
 0x1b8   : > { %1333 = vmax.xlane.f32.xlu1 %v3047_v62  ;;  %3598 = vst [vmem:[#allocation6_spill] sm:$0xff] %v3095_v26  ;;  %v3097_v27 = vsub.f32 0.0, %v1003_v22  ;;  %v1119_v16 = vmax.f32 %v1115_v25, %v3095_v26 }
 0x1b9   : > { %v2045_v29 = vpop.f32.mrf.mxu0 }
 0x1ba   : > { %3599 = vst [vmem:[#allocation7_spill] sm:$0xff] %v3097_v27  ;;  %v3106_v45 = vsub.f32 0.0, %v2045_v29  ;;  %v1118_v2 = vmax.f32 %v1114_v30, %v3097_v27 }
 0x1bb   : > { %v1013_v38 = vpop.f32.mrf.mxu0 }
 0x1bc   : > { %1331 = vmax.xlane.f32.xlu1 %v3050_v55  ;;  %v3101_v47 = vsub.f32 0.0, %v1013_v38  ;;  %3601 = vst [vmem:[#allocation9_spill] sm:$0xff] %v3106_v45  ;;  %v1121_v19 = vmax.f32 %v1117_v46, %v3106_v45 }
 0x1bd   : > { %v2048_v11 = vpop.f32.mrf.mxu0 }
 0x1be   : > { %3600 = vst [vmem:[#allocation8_spill] sm:$0xff] %v3101_v47  ;;  %v3108_v41 = vsub.f32 0.0, %v2048_v11  ;;  %v1120_v48 = vmax.f32 %v1116_v35, %v3101_v47 }
 0x1bf   : > { %v1023_v8 = vpop.f32.mrf.mxu0 }
 0x1c0   : > { %1329 = vmax.xlane.f32.xlu1 %v3053_v3  ;;  %3602 = vst [vmem:[#allocation10_spill] sm:$0xff] %v3108_v41  ;;  %v3111_v5 = vsub.f32 0.0, %v1023_v8  ;;  %v1123_v21 = vmax.f32 %v1119_v16, %v3108_v41 }
 0x1c1   : > { %v2051_v9 = vpop.f32.mrf.mxu0 }
 0x1c2   : > { %3603 = vst [vmem:[#allocation11_spill] sm:$0xff] %v3111_v5  ;;  %v3118_v59 = vsub.f32 0.0, %v2051_v9  ;;  %v1122_v20 = vmax.f32 %v1118_v2, %v3111_v5 }
 0x1c3   : > { %v1033_v14 = vpop.f32.mrf.mxu0 }
 0x1c4   : > { %1327 = vmax.xlane.f32.xlu1 %v3074_v49  ;;  %v3113_v36 = vsub.f32 0.0, %v1033_v14  ;;  %3605 = vst [vmem:[#allocation13_spill] sm:$0xff] %v3118_v59  ;;  %v1125_v22 = vmax.f32 %v1121_v19, %v3118_v59 }
 0x1c5   : > { %v2054_v60 = vpop.f32.mrf.mxu0 }
 0x1c6   : > { %3604 = vst [vmem:[#allocation12_spill] sm:$0xff] %v3113_v36  ;;  %v3121_v56 = vsub.f32 0.0, %v2054_v60  ;;  %v1124_v44 = vmax.f32 %v1120_v48, %v3113_v36 }
 0x1c7   : > { %v1043_v15 = vpop.f32.mrf.mxu0 }
 0x1c8   : > { %1325 = vmax.xlane.f32.xlu1 %v3070_v32  ;;  %v3123_v31 = vsub.f32 0.0, %v1043_v15  ;;  %v1127_v38 = vmax.f32 %v1123_v21, %v3121_v56 }
 0x1c9   : > { %v2057_v50 = vpop.f32.mrf.mxu0 }
 0x1ca   : > { %v3132_v1 = vsub.f32 0.0, %v2057_v50  ;;  %v1126_v11 = vmax.f32 %v1122_v20, %v3123_v31 }
 0x1cb   : > { %v1053_v23 = vpop.f32.mrf.mxu0 }
 0x1cc   : > { %v3125_v33 = vsub.f32 0.0, %v1053_v23  ;;  %1323 = vmax.xlane.f32.xlu1 %v3072_v54  ;;  %v1129_v14 = vmax.f32 %v1125_v22, %v3132_v1 }
 0x1cd   : > { %v2060_v51 = vpop.f32.mrf.mxu0 }
 0x1ce   : > { %v3134_v13 = vsub.f32 0.0, %v2060_v51  ;;  %v1128_v8 = vmax.f32 %v1124_v44, %v3125_v33 }
 0x1cf   : > { %v1063_v29 = vpop.f32.mrf.mxu0 }
 0x1d0   : > { %v3140_v9 = vsub.f32 0.0, %v1063_v29  ;;  %1321 = vmax.xlane.f32.xlu1 %v3059_v52  ;;  %1369 = vmax.xlane.f32.xlu0 %v3134_v13  ;;  %v1131_v28 = vmax.f32 %v1127_v38, %v3134_v13  ;;  %v1132_v10 = vmax.f32 %v1128_v8, %v1129_v14 }
 0x1d2   : > { %v1130_v37 = vmax.f32 %v1126_v11, %v3140_v9 }
 0x1d4   : > { %v1133_v17 = vmax.f32 %v1130_v37, %v1131_v28  ;;  %1319 = vmax.xlane.f32.xlu1 %v3066_v34  ;;  %1367 = vmax.xlane.f32.xlu0 %v3140_v9 }
 0x1d6   : > { %v1134_v60 = vmax.f32 %v1132_v10, %v1133_v17 }
 0x1d8   : > { %v1135_v6 = vrot.slane %v1134_v60, 4  ;;  %1317 = vmax.xlane.f32.xlu1 %v3055_v58  ;;  %1365 = vmax.xlane.f32.xlu0 %v3132_v1 }
 0x1da   : > { %v1136_v12 = vmax.f32 %v1134_v60, %v1135_v6 }
 0x1dc   : > { %v1137_v18 = vrot.slane %v1136_v12, 2  ;;  %1315 = vmax.xlane.f32.xlu1 %v3057_v61  ;;  %1363 = vmax.xlane.f32.xlu0 %v3125_v33 }
 0x1de   : > { %v1138_v7 = vmax.f32 %v1136_v12, %v1137_v18 }
 0x1e0   : > { %v1139_v15 = vrot.slane %v1138_v7, 1  ;;  %1313 = vmax.xlane.f32.xlu1 %v3068_v4  ;;  %1361 = vmax.xlane.f32.xlu0 %v3121_v56 }
 0x1e2   : > { %v3155_v0 = vmax.f32 %v1138_v7, %v1139_v15 }
 0x1e4   : > { %1311 = vmax.xlane.f32.xlu1 %v3076_v43  ;;  %1359 = vmax.xlane.f32.xlu0 %v3123_v31  ;;  %v1141_v39 = vsub.f32 %v3064_v57, %v3155_v0  ;;  %v1142_v25 = vsub.f32 %v3062_v40, %v3155_v0  ;;  %v1143_v30 = vsub.f32 %v3076_v43, %v3155_v0 }
 0x1e5   : > { %v1144_v50 = vsub.f32 %v3068_v4, %v3155_v0  ;;  %v1145_v16 = vsub.f32 %v3057_v61, %v3155_v0  ;;  %v1146_v23 = vsub.f32 %v3055_v58, %v3155_v0  ;;  %v1147_v19 = vsub.f32 %v3066_v34, %v3155_v0 }
 0x1e6   : > { %v1173_v35 = vmul.f32 1.442695, %v1141_v39  ;;  %v1175_v46 = vmul.f32 1.442695, %v1142_v25  ;;  %v1177_v2 = vmul.f32 1.442695, %v1143_v30  ;;  %v1148_v51 = vsub.f32 %v3059_v52, %v3155_v0 }
 0x1e7   : > { %v1179_v48 = vmul.f32 1.442695, %v1144_v50  ;;  %v1181_v21 = vmul.f32 1.442695, %v1145_v16  ;;  %v1183_v20 = vmul.f32 1.442695, %v1146_v23  ;;  %v1149_v44 = vsub.f32 %v3072_v54, %v3155_v0 }
 0x1e8   : > { %1309 = vmax.xlane.f32.xlu1 %v3062_v40  ;;  %1357 = vmax.xlane.f32.xlu0 %v3118_v59  ;;  %2202 = vpow2.f32 %v1173_v35  ;;  %v1185_v22 = vmul.f32 1.442695, %v1147_v19  ;;  %v1150_v29 = vsub.f32 %v3070_v32, %v3155_v0  ;;  %v1187_v38 = vmul.f32 1.442695, %v1148_v51 }
 0x1e9   : > { %2204 = vpow2.f32 %v1175_v46  ;;  %v1151_v11 = vsub.f32 %v3074_v49, %v3155_v0  ;;  %v1189_v8 = vmul.f32 1.442695, %v1149_v44  ;;  %v1152_v28 = vsub.f32 %v3053_v3, %v3155_v0 }
 0x1ea   : > { %2206 = vpow2.f32 %v1177_v2  ;;  %v1191_v37 = vmul.f32 1.442695, %v1150_v29  ;;  %v1153_v17 = vsub.f32 %v3050_v55, %v3155_v0  ;;  %v1154_v18 = vsub.f32 %v3047_v62, %v3155_v0 }
 0x1eb   : > { %2208 = vpow2.f32 %v1179_v48  ;;  %v1193_v60 = vmul.f32 1.442695, %v1151_v11  ;;  %v1195_v7 = vmul.f32 1.442695, %v1152_v28  ;;  %v1155_v25 = vsub.f32 %v3044_v42, %v3155_v0 }
 0x1ec   : > { %1307 = vmax.xlane.f32.xlu1 %v3064_v57  ;;  %1355 = vmax.xlane.f32.xlu0 %v3113_v36  ;;  %2210 = vpow2.f32 %v1181_v21  ;;  %v1197_v30 = vmul.f32 1.442695, %v1153_v17  ;;  %v1156_v46 = vsub.f32 %v3041_v53, %v3155_v0  ;;  %v1199_v16 = vmul.f32 1.442695, %v1154_v18 }
 0x1ed   : > { %2212 = vpow2.f32 %v1183_v20  ;;  %v1157_v48 = vsub.f32 %v3090_v24, %v3155_v0  ;;  %v1201_v19 = vmul.f32 1.442695, %v1155_v25  ;;  %v1158_v20 = vsub.f32 %v3093_v63, %v3155_v0 }
 0x1ee   : > { %2214 = vpow2.f32 %v1185_v22  ;;  %v1203_v44 = vmul.f32 1.442695, %v1156_v46  ;;  %v1161_v18 = vsub.f32 %v3101_v47, %v3155_v0 }
 0x1ef   : > { %2216 = vpow2.f32 %v1187_v38  ;;  %v1159_v38 = vsub.f32 %v3097_v27, %v3155_v0  ;;  %v1205_v11 = vmul.f32 1.442695, %v1157_v48  ;;  %v1207_v17 = vmul.f32 1.442695, %v1158_v20 }
 0x1f0   : > { %1353 = vmax.xlane.f32.xlu0 %v3108_v41  ;;  %2218 = vpow2.f32 %v1189_v8  ;;  %v1213_v48 = vmul.f32 1.442695, %v1161_v18  ;;  %v1164_v20 = vsub.f32 %v3108_v41, %v3155_v0 }
 0x1f1   : > { %2220 = vpow2.f32 %v1191_v37  ;;  %v1160_v37 = vsub.f32 %v3095_v26, %v3155_v0 }
 0x1f2   : > { %2222 = vpow2.f32 %v1193_v60  ;;  %v1219_v18 = vmul.f32 1.442695, %v1164_v20 }
 0x1f3   : > { %2224 = vpow2.f32 %v1195_v7  ;;  %v1209_v7 = vmul.f32 1.442695, %v1159_v38 }
 0x1f4   : > { %1351 = vmax.xlane.f32.xlu0 %v3111_v5  ;;  %2226 = vpow2.f32 %v1197_v30  ;;  %v1162_v30 = vsub.f32 %v3106_v45, %v3155_v0 }
 0x1f5   : > { %v3188_v14 = vpop.eup %2202  ;;  %2228 = vpow2.f32 %v1199_v16 }
 0x1f6   : > { %3606 = vst [vmem:[#allocation14_spill] sm:$0xff] %v3188_v14  ;;  %v3192_v10 = vpop.eup %2204  ;;  %2230 = vpow2.f32 %v1201_v19 }
 0x1f7   : > { %3607 = vst [vmem:[#allocation15_spill] sm:$0xff] %v3192_v10  ;;  %v1237_v6 = vadd.f32 %v3192_v10, %v3188_v14  ;;  %v3199_v12 = vpop.eup %2206  ;;  %2232 = vpow2.f32 %v1203_v44  ;;  %v1215_v44 = vmul.f32 1.442695, %v1162_v30  ;;  %v1167_v30 = vsub.f32 %v3123_v31, %v3155_v0 }
 0x1f8   : > { %1349 = vmax.xlane.f32.xlu0 %v3106_v45  ;;  %3608 = vst [vmem:[#allocation16_spill] sm:$0xff] %v3199_v12  ;;  %v3204_v39 = vpop.eup %2208  ;;  %2234 = vpow2.f32 %v1205_v11  ;;  %v1165_v11 = vsub.f32 %v3113_v36, %v3155_v0 }
 0x1f9   : > { %v1238_v15 = vadd.f32 %v3199_v12, %v1237_v6  ;;  %v3210_v35 = vpop.eup %2210  ;;  %2236 = vpow2.f32 %v1207_v17 }
 0x1fa   : > { %v3215_v23 = vpop.eup %2212  ;;  %2238 = vpow2.f32 %v1209_v7 }
 0x1fb   : > { %v1239_v50 = vadd.f32 %v3204_v39, %v1238_v15  ;;  %v3221_v51 = vpop.eup %2214 }
 0x1fc   : > { %1347 = vmax.xlane.f32.xlu0 %v3101_v47  ;;  %v3226_v29 = vpop.eup %2216 }
 0x1fd   : > { %v1240_v2 = vadd.f32 %v3210_v35, %v1239_v50  ;;  %v3232_v28 = vpop.eup %2218  ;;  %v1211_v50 = vmul.f32 1.442695, %v1160_v37 }
 0x1fe   : > { %v3237_v6 = vpop.eup %2220 }
 0x1ff   : > { %v1241_v21 = vadd.f32 %v3215_v23, %v1240_v2  ;;  %v3243_v25 = vpop.eup %2222  ;;  %v1163_v2 = vsub.f32 %v3111_v5, %v3155_v0  ;;  %2240 = vpow2.f32 %v1211_v50  ;;  %v1221_v50 = vmul.f32 1.442695, %v1165_v11 }
 0x200   : > { %1345 = vmax.xlane.f32.xlu0 %v3095_v26  ;;  %v3248_v16 = vpop.eup %2224  ;;  %2242 = vpow2.f32 %v1213_v48  ;;  %v1168_v48 = vsub.f32 %v3121_v56, %v3155_v0 }
 0x201   : > { %v1242_v22 = vadd.f32 %v3221_v51, %v1241_v21  ;;  %v3253_v21 = vpop.eup %2226  ;;  %2244 = vpow2.f32 %v1215_v44 }
 0x202   : > { %v3258_v38 = vpop.eup %2228 }
 0x203   : > { %v1243_v8 = vadd.f32 %v3226_v29, %v1242_v22  ;;  %v3263_v17 = vpop.eup %2230 }
 0x204   : > { %1343 = vmax.xlane.f32.xlu0 %v3097_v27 }
 0x205   : > { %v1244_v60 = vadd.f32 %v3232_v28, %v1243_v8  ;;  %v1217_v8 = vmul.f32 1.442695, %v1163_v2 }
 0x207   : > { %v1245_v15 = vadd.f32 %v3237_v6, %v1244_v60  ;;  %v1166_v60 = vsub.f32 %v3118_v59, %v3155_v0  ;;  %2246 = vpow2.f32 %v1217_v8 }
 0x208   : > { %1341 = vmax.xlane.f32.xlu0 %v3093_v63  ;;  %2248 = vpow2.f32 %v1219_v18 }
 0x209   : > { %v1246_v46 = vadd.f32 %v3243_v25, %v1245_v15  ;;  %v3268_v15 = vpop.eup %2232  ;;  %2250 = vpow2.f32 %v1221_v50 }
 0x20a   : > { %v3273_v2 = vpop.eup %2234 }
 0x20b   : > { %v1247_v19 = vadd.f32 %v3248_v16, %v1246_v46  ;;  %3609 = vst [vmem:[#allocation17_spill] sm:$0xff] %v3273_v2  ;;  %v3278_v44 = vpop.eup %2236 }
 0x20c   : > { %1339 = vmax.xlane.f32.xlu0 %v3090_v24  ;;  %3610 = vst [vmem:[#allocation18_spill] sm:$0xff] %v3278_v44  ;;  %v3283_v8 = vpop.eup %2238  ;;  %v1227_v24 = vmul.f32 1.442695, %v1168_v48 }
 0x20d   : > { %v1248_v22 = vadd.f32 %v3253_v21, %v1247_v19  ;;  %v1223_v19 = vmul.f32 1.442695, %v1166_v60  ;;  %v3288_v18 = vpop.eup %2240 }
 0x20e   : > { %v3293_v50 = vpop.eup %2242 }
 0x20f   : > { %v1249_v37 = vadd.f32 %v3258_v38, %v1248_v22  ;;  %v1169_v22 = vsub.f32 %v3125_v33, %v3155_v0  ;;  %2252 = vpow2.f32 %v1223_v19  ;;  %v3298_v19 = vpop.eup %2244 }
 0x211   : > { %v1250_v7 = vadd.f32 %v3263_v17, %v1249_v37  ;;  %v1225_v37 = vmul.f32 1.442695, %v1167_v30  ;;  %v1229_v63 = vmul.f32 1.442695, %v1169_v22 }
 0x213   : > { %v1251_v46 = vadd.f32 %v3268_v15, %v1250_v7  ;;  %v1170_v7 = vsub.f32 %v3132_v1, %v3155_v0  ;;  %2254 = vpow2.f32 %v1225_v37 }
 0x214   : > { %2256 = vpow2.f32 %v1227_v24  ;;  %v3301_v47 = vpop.eup %2246 }
 0x215   : > { %v1252_v20 = vadd.f32 %v3273_v2, %v1251_v46  ;;  %v1171_v46 = vsub.f32 %v3140_v9, %v3155_v0  ;;  %v1231_v27 = vmul.f32 1.442695, %v1170_v7  ;;  %2258 = vpow2.f32 %v1229_v63 }
 0x217   : > { %v1253_v11 = vadd.f32 %v3278_v44, %v1252_v20  ;;  %v1172_v20 = vsub.f32 %v3134_v13, %v3155_v0  ;;  %2260 = vpow2.f32 %v1231_v27 }
 0x219   : > { %v1254_v60 = vadd.f32 %v3283_v8, %v1253_v11  ;;  %v1233_v11 = vmul.f32 1.442695, %v1171_v46  ;;  %v1235_v22 = vmul.f32 1.442695, %v1172_v20 }
 0x21b   : > { %v1255_v30 = vadd.f32 %v3288_v18, %v1254_v60  ;;  %v3304_v60 = vpop.eup %2248  ;;  %2262 = vpow2.f32 %v1233_v11 }
 0x21c   : > { %v3307_v0 = vpop.eup %2250  ;;  %2264 = vpow2.f32 %v1235_v22 }
 0x21d   : > { %v1256_v48 = vadd.f32 %v3293_v50, %v1255_v30  ;;  %v3310_v63 = vpop.eup %2252 }
 0x21f   : > { %v1257_v26 = vadd.f32 %v3298_v19, %v1256_v48 }
 0x220   : > { %v3313_v30 = vpop.eup %2254 }
 0x221   : > { %v1258_v37 = vadd.f32 %v3301_v47, %v1257_v26  ;;  %v3316_v20 = vpop.eup %2256 }
 0x222   : > { %v3319_v48 = vpop.eup %2258 }
 0x223   : > { %v1259_v24 = vadd.f32 %v3304_v60, %v1258_v37 }
 0x224   : > { %v2261_v37 = vpop.eup %2260 }
 0x225   : > { %v1260_v7 = vadd.f32 %v3307_v0, %v1259_v24 }
 0x227   : > { %v1261_v46 = vadd.f32 %v3310_v63, %v1260_v7 }
 0x228   : > { %v2263_v45 = vpop.eup %2262 }
 0x229   : > { %v1262_v27 = vadd.f32 %v3313_v30, %v1261_v46  ;;  %v2265_v5 = vpop.eup %2264 }
 0x22b   : > { %v1263_v26 = vadd.f32 %v3316_v20, %v1262_v27 }
 0x22d   : > { %v1264_v11 = vadd.f32 %v3319_v48, %v1263_v26 }
 0x22f   : > { %v1265_v22 = vadd.f32 %v2261_v37, %v1264_v11 }
 0x231   : > { %v1266_v24 = vadd.f32 %v2263_v45, %v1265_v22 }
 0x233   : > { %v1267_v41 = vadd.f32 %v2265_v5, %v1266_v24 }
 0x235   : > { %v1268_v57 = vrot.slane %v1267_v41, 4 }
 0x237   : > { %v1269_v46 = vadd.f32 %v1268_v57, %v1267_v41 }
 0x239   : > { %v1338_v36 = vpop.xlane.xlu1 %1337  ;;  %v1270_v2 = vrot.slane %v1269_v46, 2 }
 0x23a   : > { %v1386_v7 = vsub.f32 %v3041_v53, %v1338_v36 }
 0x23b   : > { %v1271_v10 = vadd.f32 %v1270_v2, %v1269_v46 }
 0x23c   : > { %v1433_v14 = vmul.f32 1.442695, %v1386_v7 }
 0x23d   : > { %v1336_v59 = vpop.xlane.xlu1 %1335  ;;  %v1272_v22 = vrot.slane %v1271_v10, 1 }
 0x23e   : > { %2266 = vpow2.f32 %v1433_v14  ;;  %v1385_v27 = vsub.f32 %v3044_v42, %v1336_v59 }
 0x23f   : > { %v1273_v24 = vadd.f32 %v1272_v22, %v1271_v10 }
 0x240   : > { %v1431_v40 = vmul.f32 1.442695, %v1385_v27 }
 0x241   : > { %v1334_v26 = vpop.xlane.xlu1 %1333 }
 0x242   : > { %2268 = vpow2.f32 %v1431_v40  ;;  %v1384_v11 = vsub.f32 %v3047_v62, %v1334_v26 }
 0x244   : > { %v1429_v44 = vmul.f32 1.442695, %v1384_v11 }
 0x245   : > { %v1332_v12 = vpop.xlane.xlu1 %1331 }
 0x246   : > { %2270 = vpow2.f32 %v1429_v44  ;;  %v1383_v53 = vsub.f32 %v3050_v55, %v1332_v12 }
 0x247   : > { %2272 = vrcp.f32 %v1273_v24 }
 0x248   : > { %v1427_v57 = vmul.f32 1.442695, %v1383_v53 }
 0x249   : > { %v1330_v41 = vpop.xlane.xlu1 %1329 }
 0x24a   : > { %2274 = vpow2.f32 %v1427_v57  ;;  %v1382_v42 = vsub.f32 %v3053_v3, %v1330_v41 }
 0x24b   : > { %v3327_v36 = vpop.eup %2266 }
 0x24c   : > { %v1425_v59 = vmul.f32 1.442695, %v1382_v42  ;;  %1497 = vadd.xlane.f32.xlu1 %v3327_v36 }
 0x24d   : > { %v1328_v40 = vpop.xlane.xlu1 %1327 }
 0x24e   : > { %2276 = vpow2.f32 %v1425_v59  ;;  %v1381_v62 = vsub.f32 %v3074_v49, %v1328_v40 }
 0x24f   : > { %v3331_v14 = vpop.eup %2268 }
 0x250   : > { %v1423_v10 = vmul.f32 1.442695, %v1381_v62  ;;  %1495 = vadd.xlane.f32.xlu1 %v3331_v14 }
 0x251   : > { %v1326_v55 = vpop.xlane.xlu1 %1325 }
 0x252   : > { %2278 = vpow2.f32 %v1423_v10  ;;  %v1380_v12 = vsub.f32 %v3070_v32, %v1326_v55 }
 0x253   : > { %v3335_v2 = vpop.eup %2270 }
 0x254   : > { %v3337_v3 = vpop.eup %2272  ;;  %v1421_v44 = vmul.f32 1.442695, %v1380_v12  ;;  %1493 = vadd.xlane.f32.xlu1 %v3335_v2 }
 0x255   : > { %v1306_v7 = vmul.f32 %v3337_v3, %v2265_v5  ;;  %v1290_v49 = vmul.f32 %v3337_v3, %v3268_v15  ;;  %v1324_v46 = vpop.xlane.xlu1 %1323  ;;  %v1305_v32 = vmul.f32 %v3337_v3, %v2263_v45  ;;  %v1289_v11 = vmul.f32 %v3337_v3, %v3263_v17 }
 0x256   : > { %2280 = vpow2.f32 %v1421_v44  ;;  %v1379_v27 = vsub.f32 %v3072_v54, %v1324_v46  ;;  %v1304_v5 = vmul.f32 %v3337_v3, %v2261_v37  ;;  %v1288_v54 = vmul.f32 %v3337_v3, %v3258_v38 }
 0x257   : > { %v3344_v26 = vpop.eup %2274  ;;  %1942 = vmatprep.subr.mxu1 %v1306_v7  ;;  %v1303_v17 = vmul.f32 %v3337_v3, %v3319_v48  ;;  %v1287_v37 = vmul.f32 %v3337_v3, %v3253_v21  ;;  %v1286_v59 = vmul.f32 %v3337_v3, %v3248_v16  ;;  %v1301_v62 = vmul.f32 %v3337_v3, %v3313_v30 }
 0x258   : > { %1943 = vmatpush3.msra.mxu1 %v1290_v49  ;;  %v1419_v22 = vmul.f32 1.442695, %v1379_v27  ;;  %1491 = vadd.xlane.f32.xlu1 %v3344_v26  ;;  %v1284_v12 = vmul.f32 %v3337_v3, %v3237_v6  ;;  %v1299_v7 = vmul.f32 %v3337_v3, %v3307_v0  ;;  %v1282_v27 = vmul.f32 %v3337_v3, %v3226_v29 }
 0x259   : > { %1944 = vmatprep.subr.mxu1 %v1305_v32  ;;  %v1322_v15 = vpop.xlane.xlu1 %1321  ;;  %v1370_v24 = vpop.xlane.xlu0 %1369 }
 0x25a   : > { %1945 = vmatpush3.msra.mxu1 %v1289_v11  ;;  %2282 = vpow2.f32 %v1419_v22  ;;  %v1378_v53 = vsub.f32 %v3059_v52, %v1322_v15  ;;  %v1402_v45 = vsub.f32 %v3134_v13, %v1370_v24  ;;  %v1302_v52 = vmul.f32 %v3337_v3, %v3316_v20 }
 0x25b   : > { %v3355_v57 = vpop.eup %2276  ;;  %1946 = vmatprep.subr.mxu1 %v1304_v5  ;;  %v1285_v20 = vmul.f32 %v3337_v3, %v3243_v25  ;;  %v1297_v11 = vmul.f32 %v3337_v3, %v3301_v47  ;;  %v1280_v15 = vmul.f32 %v3337_v3, %v3215_v23  ;;  %v1278_v23 = vmul.f32 %v3337_v3, %v3204_v39 }
 0x25c   : > { %1947 = vmatpush3.msra.mxu1 %v1288_v54  ;;  %v1417_v41 = vmul.f32 1.442695, %v1378_v53  ;;  %v1465_v42 = vmul.f32 1.442695, %v1402_v45  ;;  %1489 = vadd.xlane.f32.xlu1 %v3355_v57  ;;  %v1295_v54 = vmul.f32 %v3337_v3, %v3293_v50 }
 0x25d   : > { %1948 = vmatprep.subr.mxu1 %v1303_v17  ;;  %v1320_v38 = vpop.xlane.xlu1 %1319  ;;  %v1368_v13 = vpop.xlane.xlu0 %1367 }
 0x25e   : > { %1949 = vmatpush3.msra.mxu1 %v1287_v37  ;;  %2284 = vpow2.f32 %v1417_v41  ;;  %v1377_v48 = vsub.f32 %v3066_v34, %v1320_v38  ;;  %v1401_v40 = vsub.f32 %v3140_v9, %v1368_v13  ;;  %v1300_v34 = vmul.f32 %v3337_v3, %v3310_v63 }
 0x25f   : > { %v3368_v21 = vpop.eup %2278  ;;  %1950 = vmatprep.subr.mxu1 %v1302_v52  ;;  %2286 = vpow2.f32 %v1465_v42  ;;  %v1283_v63 = vmul.f32 %v3337_v3, %v3232_v28  ;;  %v1293_v41 = vmul.f32 %v3337_v3, %v3283_v8  ;;  %v3611_v52 = vld [vmem:[#allocation16_spill] sm:$0xff] }
 0x260   : > { %1951 = vmatpush3.msra.mxu1 %v1286_v59  ;;  %v1415_v10 = vmul.f32 1.442695, %v1377_v48  ;;  %v1463_v55 = vmul.f32 1.442695, %v1401_v40  ;;  %1487 = vadd.xlane.f32.xlu1 %v3368_v21  ;;  %v1277_v38 = vmul.f32 %v3337_v3, %v3611_v52  ;;  %v3614_v40 = vld [vmem:[#allocation2_spill] sm:$0xff]  ;;  %v3623_v52 = vld [vmem:[#allocation8_spill] sm:$0xff] }
 0x261   : > { %1952 = vmatprep.subr.mxu1 %v1301_v62  ;;  %v1318_v9 = vpop.xlane.xlu1 %1317  ;;  %v1366_v16 = vpop.xlane.xlu0 %1365 }
 0x262   : > { %1953 = vmatpush3.msra.mxu1 %v1285_v20  ;;  %2288 = vpow2.f32 %v1415_v10  ;;  %v1376_v30 = vsub.f32 %v3055_v58, %v1318_v9  ;;  %v1400_v44 = vsub.f32 %v3132_v1, %v1366_v16  ;;  %v1298_v58 = vmul.f32 %v3337_v3, %v3304_v60  ;;  %v3616_v9 = vld [vmem:[#allocation13_spill] sm:$0xff] }
 0x263   : > { %v3381_v25 = vpop.eup %2280  ;;  %1954 = vmatprep.subr.mxu1 %v1300_v34  ;;  %2290 = vpow2.f32 %v1463_v55  ;;  %v1281_v60 = vmul.f32 %v3337_v3, %v3221_v51  ;;  %v3615_v55 = vld [vmem:[#allocation17_spill] sm:$0xff] }
 0x264   : > { %1955 = vmatpush3.msra.mxu1 %v1284_v12  ;;  %v1413_v49 = vmul.f32 1.442695, %v1376_v30  ;;  %v1461_v46 = vmul.f32 1.442695, %v1400_v44  ;;  %1485 = vadd.xlane.f32.xlu1 %v3381_v25  ;;  %v1291_v34 = vmul.f32 %v3337_v3, %v3615_v55  ;;  %v3617_v30 = vld [vmem:[#allocation14_spill] sm:$0xff] }
 0x265   : > { %1956 = vmatprep.subr.mxu1 %v1299_v7  ;;  %v1316_v1 = vpop.xlane.xlu1 %1315  ;;  %v1364_v6 = vpop.xlane.xlu0 %1363  ;;  %v1275_v44 = vmul.f32 %v3337_v3, %v3617_v30 }
 0x266   : > { %1957 = vmatpush3.msra.mxu1 %v1283_v63  ;;  %2292 = vpow2.f32 %v1413_v49  ;;  %v1375_v0 = vsub.f32 %v3057_v61, %v1316_v1  ;;  %v1399_v32 = vsub.f32 %v3125_v33, %v1364_v6  ;;  %v1296_v61 = vmul.f32 %v3337_v3, %v3298_v19 }
 0x267   : > { %v3394_v28 = vpop.eup %2282  ;;  %1958 = vmatprep.subr.mxu1 %v1298_v58  ;;  %2294 = vpow2.f32 %v1461_v46  ;;  %v1279_v19 = vmul.f32 %v3337_v3, %v3210_v35  ;;  %v3618_v46 = vld [vmem:[#allocation3_spill] sm:$0xff] }
 0x268   : > { %1959 = vmatpush3.msra.mxu1 %v1282_v27  ;;  %v1411_v22 = vmul.f32 1.442695, %v1375_v0  ;;  %v1459_v5 = vmul.f32 1.442695, %v1399_v32  ;;  %1483 = vadd.xlane.f32.xlu1 %v3394_v28  ;;  %v3619_v27 = vld [vmem:[#allocation12_spill] sm:$0xff] }
 0x269   : > { %1960 = vmatprep.subr.mxu1 %v1297_v11  ;;  %v1314_v33 = vpop.xlane.xlu1 %1313  ;;  %v1362_v29 = vpop.xlane.xlu0 %1361 }
 0x26a   : > { %1961 = vmatpush3.msra.mxu1 %v1281_v60  ;;  %2296 = vpow2.f32 %v1411_v22  ;;  %v1374_v47 = vsub.f32 %v3068_v4, %v1314_v33  ;;  %v1398_v24 = vsub.f32 %v3121_v56, %v1362_v29  ;;  %v1294_v4 = vmul.f32 %v3337_v3, %v3288_v18 }
 0x26b   : > { %v3407_v51 = vpop.eup %2284  ;;  %1962 = vmatprep.subr.mxu1 %v1296_v61  ;;  %2298 = vpow2.f32 %v1459_v5  ;;  %v3620_v5 = vld [vmem:[#allocation10_spill] sm:$0xff] }
 0x26c   : > { %v3411_v53 = vpop.eup %2286  ;;  %1963 = vmatpush3.msra.mxu1 %v1280_v15  ;;  %v1409_v45 = vmul.f32 1.442695, %v1374_v47  ;;  %v1457_v17 = vmul.f32 1.442695, %v1398_v24  ;;  %1481 = vadd.xlane.f32.xlu1 %v3407_v51  ;;  %v3621_v24 = vld [vmem:[#allocation11_spill] sm:$0xff] }
 0x26d   : > { %1964 = vmatprep.subr.mxu1 %v1295_v54  ;;  %1529 = vadd.xlane.f32.xlu0 %v3411_v53  ;;  %v1312_v56 = vpop.xlane.xlu1 %1311  ;;  %v1360_v37 = vpop.xlane.xlu0 %1359 }
 0x26e   : > { %1965 = vmatpush3.msra.mxu1 %v1279_v19  ;;  %2300 = vpow2.f32 %v1409_v45  ;;  %v1373_v50 = vsub.f32 %v3076_v43, %v1312_v56  ;;  %v1397_v18 = vsub.f32 %v3123_v31, %v1360_v37  ;;  %v3612_v43 = vld [vmem:[#allocation18_spill] sm:$0xff]  ;;  %v3613_v31 = vld [vmem:[#allocation15_spill] sm:$0xff]  ;;  %v3622_v56 = vld [vmem:[#allocation9_spill] sm:$0xff] }
 0x26f   : > { %v3422_v35 = vpop.eup %2288  ;;  %1966 = vmatprep.subr.mxu1 %v1294_v4  ;;  %2302 = vpow2.f32 %v1457_v17  ;;  %v1292_v39 = vmul.f32 %v3337_v3, %v3612_v43  ;;  %v1276_v8 = vmul.f32 %v3337_v3, %v3613_v31 }
 0x270   : > { %v3427_v42 = vpop.eup %2290  ;;  %1967 = vmatpush3.msra.mxu1 %v1278_v23  ;;  %v1407_v13 = vmul.f32 1.442695, %v1373_v50  ;;  %1479 = vadd.xlane.f32.xlu1 %v3422_v35  ;;  %v1455_v59 = vmul.f32 1.442695, %v1397_v18 }
 0x271   : > { %1968 = vmatprep.subr.mxu1 %v1293_v41  ;;  %1527 = vadd.xlane.f32.xlu0 %v3427_v42  ;;  %v1310_v48 = vpop.xlane.xlu1 %1309  ;;  %v1358_v20 = vpop.xlane.xlu0 %1357 }
 0x272   : > { %1969 = vmatpush3.msra.mxu1 %v1277_v38  ;;  %2304 = vpow2.f32 %v1407_v13  ;;  %v1372_v62 = vsub.f32 %v3614_v40, %v1310_v48  ;;  %v1396_v16 = vsub.f32 %v3616_v9, %v1358_v20 }
 0x273   : > { %v3438_v10 = vpop.eup %2292  ;;  %1970 = vmatprep.subr.mxu1 %v1292_v39  ;;  %2306 = vpow2.f32 %v1455_v59  ;;  %v3624_v59 = vld [vmem:[#allocation6_spill] sm:$0xff] }
 0x274   : > { %v3443_v12 = vpop.eup %2294  ;;  %1971 = vmatpush3.msra.mxu1 %v1276_v8  ;;  %v1405_v7 = vmul.f32 1.442695, %v1372_v62  ;;  %1477 = vadd.xlane.f32.xlu1 %v3438_v10  ;;  %v1453_v63 = vmul.f32 1.442695, %v1396_v16  ;;  %v3625_v62 = vld [vmem:[#allocation7_spill] sm:$0xff]  ;;  %v3626_v16 = vld [vmem:[#allocation5_spill] sm:$0xff] }
 0x275   : > { %1972 = vmatprep.subr.mxu1 %v1291_v34  ;;  %1525 = vadd.xlane.f32.xlu0 %v3443_v12  ;;  %v1308_v49 = vpop.xlane.xlu1 %1307  ;;  %v1356_v1 = vpop.xlane.xlu0 %1355 }
 0x276   : > { %1973 = vmatpush3.msra.mxu1 %v1275_v44  ;;  %2308 = vpow2.f32 %v1405_v7  ;;  %v1371_v58 = vsub.f32 %v3618_v46, %v1308_v49  ;;  %v1395_v0 = vsub.f32 %v3619_v27, %v1356_v1  ;;  %v3627_v49 = vld [vmem:[#allocation4_spill] sm:$0xff] }
 0x277   : > { %v3450_v6 = vpop.eup %2296  ;;  %2310 = vpow2.f32 %v1453_v63 }
 0x278   : > { %v3453_v32 = vpop.eup %2298  ;;  %v1403_v3 = vmul.f32 1.442695, %v1371_v58  ;;  %1475 = vadd.xlane.f32.xlu1 %v3450_v6  ;;  %v1451_v11 = vmul.f32 1.442695, %v1395_v0 }
 0x279   : > { %1523 = vadd.xlane.f32.xlu0 %v3453_v32  ;;  %v1354_v60 = vpop.xlane.xlu0 %1353 }
 0x27a   : > { %2312 = vpow2.f32 %v1403_v3  ;;  %v1394_v61 = vsub.f32 %v3620_v5, %v1354_v60  ;;  %v246_v60 = vld [vmem:[%s227_s28] sm:$0xff] }
 0x27b   : > { %v3457_v22 = vpop.eup %2300  ;;  %2314 = vpow2.f32 %v1451_v11  ;;  %v1596_v5 = vcombine.high %v246_v60, %v246_v60 }
 0x27c   : > { %v3460_v33 = vpop.eup %2302  ;;  %1473 = vadd.xlane.f32.xlu1 %v3457_v22  ;;  %v1449_v29 = vmul.f32 1.442695, %v1394_v61 }
 0x27d   : > { %1521 = vadd.xlane.f32.xlu0 %v3460_v33  ;;  %v1352_v15 = vpop.xlane.xlu0 %1351  ;;  %1662 = vmatprep.mubr.f32.mxu1 %v1596_v5 }
 0x27e   : > { %2316 = vpow2.f32 %v1449_v29  ;;  %v1393_v54 = vsub.f32 %v3621_v24, %v1352_v15  ;;  %1663 = vmatmul.mubr.f32.vlgmr.msra.gmra.mxu1 %v246_v60 }
 0x27f   : > { %v3464_v47 = vpop.eup %2304 }
 0x280   : > { %v3467_v19 = vpop.eup %2306  ;;  %1471 = vadd.xlane.f32.xlu1 %v3464_v47  ;;  %v1447_v45 = vmul.f32 1.442695, %v1393_v54 }
 0x281   : > { %1519 = vadd.xlane.f32.xlu0 %v3467_v19  ;;  %v1350_v17 = vpop.xlane.xlu0 %1349 }
 0x282   : > { %2318 = vpow2.f32 %v1447_v45  ;;  %v1392_v23 = vsub.f32 %v3622_v56, %v1350_v17 }
 0x283   : > { %v3471_v4 = vpop.eup %2308 }
 0x284   : > { %v3474_v50 = vpop.eup %2310  ;;  %1469 = vadd.xlane.f32.xlu1 %v3471_v4  ;;  %v1445_v37 = vmul.f32 1.442695, %v1392_v23 }
 0x285   : > { %1517 = vadd.xlane.f32.xlu0 %v3474_v50  ;;  %v1348_v41 = vpop.xlane.xlu0 %1347 }
 0x286   : > { %2320 = vpow2.f32 %v1445_v37  ;;  %v1391_v38 = vsub.f32 %v3623_v52, %v1348_v41 }
 0x287   : > { %v3478_v18 = vpop.eup %2312 }
 0x288   : > { %v3481_v13 = vpop.eup %2314  ;;  %1467 = vadd.xlane.f32.xlu1 %v3478_v18  ;;  %v1443_v43 = vmul.f32 1.442695, %v1391_v38 }
 0x289   : > { %1515 = vadd.xlane.f32.xlu0 %v3481_v13  ;;  %v1346_v39 = vpop.xlane.xlu0 %1345 }
 0x28a   : > { %2322 = vpow2.f32 %v1443_v43  ;;  %v1390_v48 = vsub.f32 %v3624_v59, %v1346_v39 }
 0x28b   : > { %v3486_v31 = vpop.eup %2316 }
 0x28c   : > { %v1441_v8 = vmul.f32 1.442695, %v1390_v48 }
 0x28d   : > { %1513 = vadd.xlane.f32.xlu0 %v3486_v31  ;;  %v1344_v40 = vpop.xlane.xlu0 %1343 }
 0x28e   : > { %2324 = vpow2.f32 %v1441_v8  ;;  %v1389_v20 = vsub.f32 %v3625_v62, %v1344_v40 }
 0x28f   : > { %v3490_v55 = vpop.eup %2318 }
 0x290   : > { %v1439_v34 = vmul.f32 1.442695, %v1389_v20 }
 0x291   : > { %1511 = vadd.xlane.f32.xlu0 %v3490_v55  ;;  %v1342_v9 = vpop.xlane.xlu0 %1341 }
 0x292   : > { %2326 = vpow2.f32 %v1439_v34  ;;  %v1388_v30 = vsub.f32 %v3626_v16, %v1342_v9 }
 0x293   : > { %v3494_v44 = vpop.eup %2320 }
 0x294   : > { %v1437_v7 = vmul.f32 1.442695, %v1388_v30 }
 0x295   : > { %1509 = vadd.xlane.f32.xlu0 %v3494_v44  ;;  %v1340_v63 = vpop.xlane.xlu0 %1339 }
 0x296   : > { %2328 = vpow2.f32 %v1437_v7  ;;  %v1387_v46 = vsub.f32 %v3627_v49, %v1340_v63 }
 0x297   : > { %v3498_v58 = vpop.eup %2322 }
 0x298   : > { %v1435_v1 = vmul.f32 1.442695, %v1387_v46 }
 0x299   : > { %1507 = vadd.xlane.f32.xlu0 %v3498_v58 }
 0x29a   : > { %2330 = vpow2.f32 %v1435_v1 }
 0x29b   : > { %v3501_v27 = vpop.eup %2324 }
 0x29d   : > { %1505 = vadd.xlane.f32.xlu0 %v3501_v27 }
 0x29f   : > { %v3504_v0 = vpop.eup %2326 }
 0x2a1   : > { %1503 = vadd.xlane.f32.xlu0 %v3504_v0 }
 0x2a3   : > { %v3507_v3 = vpop.eup %2328 }
 0x2a5   : > { %1501 = vadd.xlane.f32.xlu0 %v3507_v3 }
 0x2a7   : > { %v3510_v11 = vpop.eup %2330 }
 0x2a9   : > { %1499 = vadd.xlane.f32.xlu0 %v3510_v11 }
 0x2d5   : > { %v1498_v61 = vpop.xlane.xlu1 %1497 }
 0x2d6   : > { %2332 = vrcp.f32 %v1498_v61 }
 0x2d9   : > { %v1496_v29 = vpop.xlane.xlu1 %1495 }
 0x2dd   : > { %v1494_v15 = vpop.xlane.xlu1 %1493 }
 0x2e1   : > { %v1492_v24 = vpop.xlane.xlu1 %1491 }
 0x2e3   : > { %v2333_v38 = vpop.eup %2332 }
 0x2e4   : > { %v1562_v8 = vmul.f32 %v2333_v38, %v3327_v36 }
 0x2e5   : > { %v1490_v54 = vpop.xlane.xlu1 %1489 }
 0x2e9   : > { %v1488_v45 = vpop.xlane.xlu1 %1487 }
 0x2ed   : > { %v1486_v56 = vpop.xlane.xlu1 %1485 }
 0x2f1   : > { %v1484_v41 = vpop.xlane.xlu1 %1483 }
 0x2f5   : > { %v1482_v39 = vpop.xlane.xlu1 %1481 }
 0x2f6   : > { %v1530_v17 = vpop.xlane.xlu0 %1529 }
 0x2f7   : > { %2334 = vrcp.f32 %v1530_v17 }
 0x2f8   : > { %2336 = vrcp.f32 %v1496_v29 }
 0x2f9   : > { %v1480_v30 = vpop.xlane.xlu1 %1479 }
 0x2fa   : > { %v1528_v23 = vpop.xlane.xlu0 %1527 }
 0x2fb   : > { %2338 = vrcp.f32 %v1528_v23 }
 0x2fc   : > { %2340 = vrcp.f32 %v1494_v15 }
 0x2fd   : > { %v1478_v46 = vpop.xlane.xlu1 %1477 }
 0x2fe   : > { %v1526_v37 = vpop.xlane.xlu0 %1525 }
 0x2ff   : > { %2342 = vrcp.f32 %v1526_v37 }
 0x300   : > { %2344 = vrcp.f32 %v1492_v24 }
 0x301   : > { %v1476_v24 = vpop.xlane.xlu1 %1475 }
 0x302   : > { %v1524_v52 = vpop.xlane.xlu0 %1523 }
 0x303   : > { %2346 = vrcp.f32 %v1524_v52 }
 0x304   : > { %v2335_v43 = vpop.eup %2334  ;;  %2348 = vrcp.f32 %v1490_v54 }
 0x305   : > { %v1594_v59 = vmul.f32 %v2335_v43, %v3411_v53  ;;  %v2337_v40 = vpop.eup %2336 }
 0x306   : > { %v1522_v48 = vpop.xlane.xlu0 %1521  ;;  %v1560_v9 = vmul.f32 %v2337_v40, %v3331_v14 }
 0x307   : > { %2350 = vrcp.f32 %v1522_v48  ;;  %1977 = vmatprep.subr.mxu0 %v1594_v59 }
 0x308   : > { %v2339_v62 = vpop.eup %2338  ;;  %1978 = vmatpush3.xpose.msra.mxu0 %v1562_v8  ;;  %2352 = vrcp.f32 %v1488_v45 }
 0x309   : > { %v1592_v20 = vmul.f32 %v2339_v62, %v3427_v42  ;;  %v2341_v16 = vpop.eup %2340 }
 0x30a   : > { %v1520_v34 = vpop.xlane.xlu0 %1519  ;;  %v1558_v63 = vmul.f32 %v2341_v16, %v3335_v2 }
 0x30b   : > { %2354 = vrcp.f32 %v1520_v34  ;;  %1979 = vmatprep.subr.mxu0 %v1592_v20 }
 0x30c   : > { %v2343_v53 = vpop.eup %2342  ;;  %1980 = vmatpush3.xpose.msra.mxu0 %v1560_v9  ;;  %2356 = vrcp.f32 %v1486_v56  ;;  %v1474_v56 = vpop.xlane.xlu1 %1473 }
 0x30d   : > { %v1590_v7 = vmul.f32 %v2343_v53, %v3443_v12  ;;  %v2345_v49 = vpop.eup %2344 }
 0x30e   : > { %v1518_v36 = vpop.xlane.xlu0 %1517  ;;  %v1556_v60 = vmul.f32 %v2345_v49, %v3344_v26 }
 0x30f   : > { %2358 = vrcp.f32 %v1518_v36  ;;  %1981 = vmatprep.subr.mxu0 %v1590_v7 }
 0x310   : > { %v2347_v42 = vpop.eup %2346  ;;  %1982 = vmatpush3.xpose.msra.mxu0 %v1558_v63  ;;  %2360 = vrcp.f32 %v1484_v41 }
 0x311   : > { %v1588_v14 = vmul.f32 %v2347_v42, %v3453_v32  ;;  %v2349_v5 = vpop.eup %2348 }
 0x312   : > { %v1516_v1 = vpop.xlane.xlu0 %1515  ;;  %v1554_v29 = vmul.f32 %v2349_v5, %v3355_v57 }
 0x313   : > { %2362 = vrcp.f32 %v1516_v1  ;;  %1983 = vmatprep.subr.mxu0 %v1588_v14 }
 0x314   : > { %v2351_v12 = vpop.eup %2350  ;;  %1984 = vmatpush3.xpose.msra.mxu0 %v1556_v60  ;;  %2364 = vrcp.f32 %v1482_v39  ;;  %v1472_v39 = vpop.xlane.xlu1 %1471 }
 0x315   : > { %v1586_v61 = vmul.f32 %v2351_v12, %v3460_v33  ;;  %v2353_v15 = vpop.eup %2352 }
 0x316   : > { %v1514_v2 = vpop.xlane.xlu0 %1513  ;;  %v1552_v45 = vmul.f32 %v2353_v15, %v3368_v21 }
 0x317   : > { %2366 = vrcp.f32 %v1514_v2  ;;  %1985 = vmatprep.subr.mxu0 %v1586_v61 }
 0x318   : > { %v2355_v32 = vpop.eup %2354  ;;  %1986 = vmatpush3.xpose.msra.mxu0 %v1554_v29  ;;  %2368 = vrcp.f32 %v1480_v30  ;;  %v1470_v40 = vpop.xlane.xlu1 %1469 }
 0x319   : > { %v1584_v54 = vmul.f32 %v2355_v32, %v3467_v19  ;;  %v2357_v17 = vpop.eup %2356 }
 0x31a   : > { %v1512_v26 = vpop.xlane.xlu0 %1511  ;;  %v1550_v37 = vmul.f32 %v2357_v17, %v3381_v25 }
 0x31b   : > { %2370 = vrcp.f32 %v1512_v26  ;;  %1987 = vmatprep.subr.mxu0 %v1584_v54 }
 0x31c   : > { %v2359_v33 = vpop.eup %2358  ;;  %1988 = vmatpush3.xpose.msra.mxu0 %v1552_v45  ;;  %2372 = vrcp.f32 %v1478_v46  ;;  %v1468_v53 = vpop.xlane.xlu1 %1467 }
 0x31d   : > { %v1582_v57 = vmul.f32 %v2359_v33, %v3474_v50  ;;  %v2361_v41 = vpop.eup %2360 }
 0x31e   : > { %v1510_v23 = vpop.xlane.xlu0 %1509  ;;  %v1548_v38 = vmul.f32 %v2361_v41, %v3394_v28 }
 0x31f   : > { %2374 = vrcp.f32 %v1510_v23  ;;  %1989 = vmatprep.subr.mxu0 %v1582_v57 }
 0x320   : > { %v2363_v19 = vpop.eup %2362  ;;  %1990 = vmatpush3.xpose.msra.mxu0 %v1550_v37  ;;  %2376 = vrcp.f32 %v1476_v24 }
 0x321   : > { %v1580_v52 = vmul.f32 %v2363_v19, %v3481_v13  ;;  %v2365_v43 = vpop.eup %2364 }
 0x322   : > { %v1508_v21 = vpop.xlane.xlu0 %1507  ;;  %v1546_v48 = vmul.f32 %v2365_v43, %v3407_v51 }
 0x323   : > { %2378 = vrcp.f32 %v1508_v21  ;;  %1991 = vmatprep.subr.mxu0 %v1580_v52 }
 0x324   : > { %v2367_v50 = vpop.eup %2366  ;;  %1992 = vmatpush3.xpose.msra.mxu0 %v1548_v38  ;;  %2380 = vrcp.f32 %v1474_v56 }
 0x325   : > { %v1578_v59 = vmul.f32 %v2367_v50, %v3486_v31  ;;  %v2369_v8 = vpop.eup %2368 }
 0x326   : > { %v1506_v25 = vpop.xlane.xlu0 %1505  ;;  %v1544_v20 = vmul.f32 %v2369_v8, %v3422_v35 }
 0x327   : > { %2382 = vrcp.f32 %v1506_v25  ;;  %1993 = vmatprep.subr.mxu0 %v1578_v59 }
 0x328   : > { %v2371_v13 = vpop.eup %2370  ;;  %1994 = vmatpush3.xpose.msra.mxu0 %v1546_v48  ;;  %2384 = vrcp.f32 %v1472_v39 }
 0x329   : > { %v1576_v28 = vmul.f32 %v2371_v13, %v3490_v55  ;;  %v2373_v34 = vpop.eup %2372 }
 0x32a   : > { %v1504_v62 = vpop.xlane.xlu0 %1503  ;;  %v1542_v16 = vmul.f32 %v2373_v34, %v3438_v10 }
 0x32b   : > { %2386 = vrcp.f32 %v1504_v62  ;;  %1995 = vmatprep.subr.mxu0 %v1576_v28 }
 0x32c   : > { %v2375_v31 = vpop.eup %2374  ;;  %1996 = vmatpush3.xpose.msra.mxu0 %v1544_v20  ;;  %2388 = vrcp.f32 %v1470_v40 }
 0x32d   : > { %v1574_v9 = vmul.f32 %v2375_v31, %v3494_v44  ;;  %v2377_v30 = vpop.eup %2376 }
 0x32e   : > { %v1502_v51 = vpop.xlane.xlu0 %1501  ;;  %v1540_v36 = vmul.f32 %v2377_v30, %v3450_v6 }
 0x32f   : > { %2390 = vrcp.f32 %v1502_v51  ;;  %1997 = vmatprep.subr.mxu0 %v1574_v9 }
 0x330   : > { %v2379_v55 = vpop.eup %2378  ;;  %1998 = vmatpush3.xpose.msra.mxu0 %v1542_v16  ;;  %2392 = vrcp.f32 %v1468_v53 }
 0x331   : > { %v1572_v7 = vmul.f32 %v2379_v55, %v3498_v58  ;;  %v2381_v63 = vpop.eup %2380 }
 0x332   : > { %v1500_v35 = vpop.xlane.xlu0 %1499  ;;  %v1538_v10 = vmul.f32 %v2381_v63, %v3457_v22 }
 0x333   : > { %2394 = vrcp.f32 %v1500_v35  ;;  %1999 = vmatprep.subr.mxu0 %v1572_v7 }
 0x334   : > { %v2383_v44 = vpop.eup %2382  ;;  %2000 = vmatpush3.xpose.msra.mxu0 %v1540_v36 }
 0x335   : > { %v1570_v49 = vmul.f32 %v2383_v44, %v3501_v27  ;;  %v2385_v42 = vpop.eup %2384 }
 0x336   : > { %v1536_v58 = vmul.f32 %v2385_v42, %v3464_v47  ;;  %v2397_v47 = vld [vmem:[%s2505_s24] sm:$0xf] }
 0x337   : > { %2001 = vmatprep.subr.mxu0 %v1570_v49 }
 0x338   : > { %v2387_v46 = vpop.eup %2386  ;;  %2002 = vmatpush3.xpose.msra.mxu0 %v1538_v10 }
 0x339   : > { %v1568_v14 = vmul.f32 %v2387_v46, %v3504_v0  ;;  %v2389_v1 = vpop.eup %2388 }
 0x33a   : > { %v1534_v27 = vmul.f32 %v2389_v1, %v3471_v4 }
 0x33b   : > { %2003 = vmatprep.subr.mxu0 %v1568_v14 }
 0x33c   : > { %v2391_v6 = vpop.eup %2390  ;;  %2004 = vmatpush3.xpose.msra.mxu0 %v1536_v58 }
 0x33d   : > { %v1566_v60 = vmul.f32 %v2391_v6, %v3507_v3  ;;  %v2393_v5 = vpop.eup %2392 }
 0x33e   : > { %v1532_v0 = vmul.f32 %v2393_v5, %v3478_v18  ;;  %v1974_v61 = vpop.f32.mrf.mxu1 }
 0x33f   : > { %2005 = vmatprep.subr.mxu0 %v1566_v60 }
 0x340   : > { %v2395_v22 = vpop.eup %2394  ;;  %2006 = vmatpush3.xpose.msra.mxu0 %v1534_v27  ;;  %v1975_v2 = vpop.f32.mrf.mxu1 }
 0x341   : > { %v1564_v12 = vmul.f32 %v2395_v22, %v3510_v11  ;;  %v1976_v29 = vadd.f32 %v1975_v2, %v1974_v61 }
 0x343   : > { %2007 = vmatprep.subr.mxu0 %v1564_v12  ;;  %v1746_v4 = vmul.f32 0.001, %v1976_v29 }
 0x344   : > { %2008 = vmatpush3.xpose.msra.mxu0 %v1532_v0 }
 0x345   : > { %1747 = vst [vmem:[%s245_s5] sm:$0xf] %v1746_v4 }
 0x347   : > { %2010 = vmatmul.mubr.f32.vlgmr.msra.gmra.mxu0 %v2397_v47 }
 0x407   : > { %v1734_v3 = vpop.f32.mrf.mxu0 }
 0x408   : > { %v1739_v11 = vmul.f32 0.001, %v1734_v3 }
 0x409   : > { %v1736_v15 = vpop.f32.mrf.mxu0 }
 0x40a   : > { %v1740_v24 = vmul.f32 0.001, %v1736_v15 }
 0x40c   : > { %v1743_v18 = vcombine.low %v1739_v11, %v1740_v24 }
 0x40e   : > { %1745 = vst [vmem:[%s241_s8] sm:$0xff] %v1743_v18 }
 0x40f PF: > { %s15_s15 = sadd.s32 1, %s2404_s15  }
 0x410   : > { %p12_p4 = scmp.ge.s32.totalorder %s15_s15, 4  }
 0x412   :  { %14 = sbr.rel (!%p12_p4) target bundleno = 1 (0x1), region = 80 }

</bundles_post_ra>
